<compile_context>
chip_gen: v7x
topology: tpu7x:2x2x1
jax: 0.10.0
libtpu: 0.0.40
codegen_flags: <defaults>
</compile_context>

<pallas_src>
import jax
import jax.numpy as jnp
from jax import lax
from jax.experimental import pallas as pl
from jax.experimental.pallas import tpu as pltpu

# ----------------------------- model dimensions -----------------------------
VOCAB = 8          # number of log events in the embedding table
EMB_DIM = 128      # pretrained event2vec embedding width (fc_input expects 128)
D_EMBD = 16        # per-head input size
N_HEAD = 2         # n_model
HIDDEN = 32        # hidden_size
N_LAYER = 2        # num LSTM layers (fixed to 2, as in the module default)
N_EVENTS = 8       # fc_out output size
B, S = 2, 8        # batch, sequence length

HH = N_HEAD * HIDDEN        # 64  : per-layer packed state width [head0 | head1]
WCAT = 2 * HH               # 128 : combined [layer0 | layer1] state width
G2 = 4 * WCAT               # 512 : combined gate width, blocks [i|f|o|g]
BP = 8                      # padded batch rows (one sublane tile)
OUT_PAD = 128               # lane-dense padded output width


# ------------------------------- Pallas kernel -------------------------------
def _fused_forward_kernel(ids_ref, t0_ref, wwave_ref, wout_ref, bout_ref, o_ref):
    """Whole forward pass in one kernel (wavefront LSTM over both layers/heads).

    Packed layouts (built host-side in pack_params):
      ids:   (S*BP, 1) int32, time-major rows (r = t*BP + b), dummy rows = 0
      t0:    (VOCAB, G2)  x-gate table: L0 cols = (emb@fc_in+b_in)@Wx0 + b0,
                          L1 cols = b1 (constant per row)
      wwave: (WCAT, G2)   [[wh0 | wx1], [0 | wh1]]  (block-diag over heads,
                          gate blocks [i|f|o|g], each block = [L0(64)|L1(64)])
      wout:  (WCAT, 128)  rows 0:HH zero, rows HH: = diag(ws) @ fc_out_w, cols
                          padded to 128
      bout:  (1, 128)     fc_out_b + bs @ fc_out_w, padded to 128
    State layout: h_cat/c_cat = [h0(64) | h1(64)] per row.
    """
    Bp = o_ref.shape[0]
    total = ids_ref.shape[0]
    seq_len = total // Bp
    Wc = wwave_ref.shape[0]            # 128
    G = wwave_ref.shape[1]             # 512
    vocab = t0_ref.shape[0]
    SIG = 3 * Wc                       # sigmoid slab width (i|f|o for both layers)

    # hoisted, loop-invariant weight read
    w_wave = wwave_ref[...]

    # ---- embedding + fc_input + layer-0 x-path + b0 (+ b1), ALL timesteps -----
    onehot = (ids_ref[...] ==
              lax.broadcasted_iota(jnp.int32, (total, vocab), 1)
              ).astype(jnp.float32)                                  # (S*Bp, V)
    xg_all = jnp.dot(onehot, t0_ref[...],
                     preferred_element_type=jnp.float32)             # (S*Bp, G)

    h_cat = jnp.zeros((Bp, Wc), jnp.float32)
    c_cat = jnp.zeros((Bp, Wc), jnp.float32)
    # mask that zeroes the layer-1 half (only used after wavefront step 0)
    l0_mask = (lax.broadcasted_iota(jnp.int32, (Bp, Wc), 1)
               < (Wc // 2)).astype(jnp.float32)

    # Fully unrolled wavefront: step s computes layer-0(t=s) and layer-1(t=s-1)
    # from h_cat = [h0(s-1) | h1(s-2)] with ONE matmul, ONE sigmoid, TWO tanh.
    for s in range(seq_len + 1):
        t = min(s, seq_len - 1)                                      # static
        xg = xg_all[t * Bp:(t + 1) * Bp, :]                          # aligned view
        if s == 0:
            gates = xg                       # h_cat is all-zero: skip the dot
        else:
            gates = xg + jnp.dot(h_cat, w_wave,
                                 preferred_element_type=jnp.float32)
        sig = jax.nn.sigmoid(gates[:, :SIG])                         # (Bp, 384)
        g_g = jnp.tanh(gates[:, SIG:])                               # (Bp, 128)
        i_g = sig[:, 0 * Wc:1 * Wc]
        f_g = sig[:, 1 * Wc:2 * Wc]
        o_g = sig[:, 2 * Wc:3 * Wc]
        c_new = f_g * c_cat + i_g * g_g
        h_new = o_g * jnp.tanh(c_new)
        if s == 0:
            # layer-1 half at s=0 corresponds to a nonexistent t=-1: keep it 0
            h_new = h_new * l0_mask
            c_new = c_new * l0_mask
        h_cat, c_cat = h_new, c_new

    # Epilogue: fc_out with Ws/bs folded in. wout's top HH rows are zero, so the
    # full (Bp, 128) state feeds the dot directly (no mid-vreg lane slice) and
    # only h1(S-1) contributes. Output tile is lane-dense (8, 128).
    o_ref[...] = (jnp.dot(h_cat, wout_ref[...],
                          preferred_element_type=jnp.float32)
                  + bout_ref[...]).astype(o_ref.dtype)


def forward_pallas(x_idx, PP):
    """x_idx: (B, S, 1) int32 token ids; PP: packed params (see pack_params)."""
    Bsz, seq_len, _ = x_idx.shape
    # time-major ids, batch rows padded to BP=8 (dummy rows use valid id 0)
    ids = x_idx[..., 0].astype(jnp.int32).T                          # (S, B)
    ids_p = jnp.zeros((seq_len, BP), jnp.int32).at[:, :Bsz].set(ids)
    ids_tm = ids_p.reshape(seq_len * BP, 1)

    out_p = pl.pallas_call(
        _fused_forward_kernel,
        out_shape=jax.ShapeDtypeStruct((BP, OUT_PAD), jnp.float32),
        grid=(1,),
        in_specs=[
            pl.BlockSpec((seq_len * BP, 1), lambda i: (0, 0)),   # ids
            pl.BlockSpec((VOCAB, G2), lambda i: (0, 0)),         # t0
            pl.BlockSpec((WCAT, G2), lambda i: (0, 0)),          # w_wave
            pl.BlockSpec((WCAT, OUT_PAD), lambda i: (0, 0)),     # fc_out w (folded)
            pl.BlockSpec((1, OUT_PAD), lambda i: (0, 0)),        # fc_out b (folded)
        ],
        out_specs=pl.BlockSpec((BP, OUT_PAD), lambda i: (0, 0)),
        compiler_params=pltpu.CompilerParams(
            dimension_semantics=("arbitrary",)),
    )(ids_tm, PP['t0'], PP['w_wave'], PP['wout'], PP['bout'])
    return out_p[:Bsz, :N_EVENTS]


# ------------------------- parameter packing (host side) ---------------------
def pack_params(P):
    """Fold / repack the PyTorch-layout params into the fused-kernel layout."""
    D, H, NH = D_EMBD, HIDDEN, N_HEAD
    # dest gate-block order [i, f, o, g]; PyTorch source order is [i, f, g, o]
    src_gate = (0, 1, 3, 2)
    G1 = 4 * HH

    def permuted_block_diag(w, in_dim):
        # w: (NH, in_dim, 4H) -> (NH*in_dim, G1) block-diag, gate-permuted cols.
        out = jnp.zeros((NH * in_dim, G1), jnp.float32)
        for h in range(NH):
            for dg, sg in enumerate(src_gate):
                out = out.at[h * in_dim:(h + 1) * in_dim,
                             (dg * NH + h) * H:(dg * NH + h + 1) * H].set(
                                 w[h, :, sg * H:(sg + 1) * H])
        return out

    def permuted_bias(b):
        # b: (NH, 1, 4H) -> (1, G1)
        out = jnp.zeros((1, G1), jnp.float32)
        for h in range(NH):
            for dg, sg in enumerate(src_gate):
                out = out.at[0, (dg * NH + h) * H:(dg * NH + h + 1) * H].set(
                    b[h, 0, sg * H:(sg + 1) * H])
        return out

    def place_layer(dst, src, layer):
        # src: (rows, G1) per-layer packed; put each gate block into the layer
        # slot inside the combined [i|f|o|g] x [L0|L1] layout (rows, G2).
        for dg in range(4):
            dst = dst.at[:, dg * WCAT + layer * HH:
                         dg * WCAT + (layer + 1) * HH].set(
                             src[:, dg * HH:(dg + 1) * HH])
        return dst

    # ---- t0: embedding -> fc_input -> layer-0 x weights -> b0, plus b1 -------
    table = P['embedding'] @ P['fc_in_w'] + P['fc_in_b']       # (VOCAB, NH*D)
    wx0 = permuted_block_diag(P['wih0'], D)                    # (NH*D, G1)
    xg0 = table @ wx0 + permuted_bias(P['b0'])                 # (VOCAB, G1)
    b1p = jnp.broadcast_to(permuted_bias(P['b1']), (VOCAB, G1))
    t0 = jnp.zeros((VOCAB, G2), jnp.float32)
    t0 = place_layer(t0, xg0, 0)
    t0 = place_layer(t0, b1p, 1)                               # (VOCAB, G2)

    # ---- wavefront weight [[wh0 | wx1], [0 | wh1]] ----------------------------
    wh0p = permuted_block_diag(P['whh0'], H)                   # (HH, G1)
    wx1p = permuted_block_diag(P['wih1'], H)                   # (HH, G1)
    wh1p = permuted_block_diag(P['whh1'], H)                   # (HH, G1)
    top = place_layer(jnp.zeros((HH, G2), jnp.float32), wh0p, 0)
    top = place_layer(top, wx1p, 1)
    bot = place_layer(jnp.zeros((HH, G2), jnp.float32), wh1p, 1)
    w_wave = jnp.concatenate([top, bot], axis=0)               # (WCAT, G2)

    # ---- fold Ws/bs into fc_out; pad to lane-dense 128 output ----------------
    ws_vec = P['ws'].reshape(HH)                               # [head0 | head1]
    bs_vec = P['bs'].reshape(1, HH)
    wout_scaled = ws_vec[:, None] * P['fc_out_w']              # (HH, N_EVENTS)
    wout = jnp.zeros((WCAT, OUT_PAD), jnp.float32
                     ).at[HH:, :N_EVENTS].set(wout_scaled)
    bout = jnp.zeros((1, OUT_PAD), jnp.float32
                     ).at[0, :N_EVENTS].set(P['fc_out_b'] +
                                            (bs_vec @ P['fc_out_w'])[0])

    return dict(t0=t0, w_wave=w_wave, wout=wout, bout=bout)


# ---------------------------- pure-JAX reference ------------------------------
def _cell_ref(x_t, h, c, wih, whh, b):
    H = HIDDEN
    g = x_t @ wih + h @ whh + b
    i_g = jax.nn.sigmoid(g[:, :H])
    f_g = jax.nn.sigmoid(g[:, H:2 * H])
    g_g = jnp.tanh(g[:, 2 * H:3 * H])
    o_g = jax.nn.sigmoid(g[:, 3 * H:])
    c = f_g * c + i_g * g_g
    return o_g * jnp.tanh(c), c


def forward_ref(x_idx, P):
    """Pure-JAX reference mirroring the PyTorch forward (original layouts)."""
    batch, seq_len, _ = x_idx.shape
    ids = x_idx[..., 0]
    emb = P['embedding'][ids]
    h = emb.reshape(batch * seq_len, EMB_DIM) @ P['fc_in_w'] + P['fc_in_b']
    h = h.reshape(batch, seq_len, N_HEAD, D_EMBD).transpose(0, 2, 1, 3)
    outs = []
    for i in range(N_HEAD):
        xh = h[:, i]
        h0 = c0 = h1 = c1 = jnp.zeros((batch, HIDDEN), jnp.float32)
        for t in range(seq_len):
            h0, c0 = _cell_ref(xh[:, t], h0, c0, P['wih0'][i], P['whh0'][i], P['b0'][i, 0])
            h1, c1 = _cell_ref(h0, h1, c1, P['wih1'][i], P['whh1'][i], P['b1'][i, 0])
        outs.append(P['ws'][i, 0] * h1 + P['bs'][i, 0])
    cat = jnp.concatenate(outs, axis=1)
    return cat @ P['fc_out_w'] + P['fc_out_b']


# ------------------------------- parameter init ------------------------------
def init_params(key):
    # Deterministic synthetic init (kaiming-like scale). NOTE: the original
    # module initializes Ws/bs to zeros (never re-initialized since dim==1);
    # we use nonzero values so the full compute path is exercised.
    ks = jax.random.split(key, 13)

    def nrm(k, shape, fan_in, scale=1.0):
        return (jax.random.normal(k, shape, jnp.float32)
                * (scale / jnp.sqrt(jnp.float32(fan_in)))).astype(jnp.float32)

    P = {}
    # TODO(synk): the real module loads the event2vec embedding from a JSON
    # file; a synthetic table is used here instead.
    P['embedding'] = nrm(ks[0], (VOCAB, EMB_DIM), EMB_DIM)
    P['fc_in_w'] = nrm(ks[1], (EMB_DIM, D_EMBD * N_HEAD), EMB_DIM)
    P['fc_in_b'] = nrm(ks[2], (D_EMBD * N_HEAD,), 1.0, 0.1)
    # layer-0 LSTM (input D_EMBD), layer-1 LSTM (input HIDDEN); weights (in, 4H)
    # stored in PyTorch gate order (i, f, g, o); b = b_ih + b_hh fused.
    P['wih0'] = nrm(ks[3], (N_HEAD, D_EMBD, 4 * HIDDEN), D_EMBD)
    P['whh0'] = nrm(ks[4], (N_HEAD, HIDDEN, 4 * HIDDEN), HIDDEN)
    P['b0'] = nrm(ks[5], (N_HEAD, 1, 4 * HIDDEN), 1.0, 0.1)
    P['wih1'] = nrm(ks[6], (N_HEAD, HIDDEN, 4 * HIDDEN), HIDDEN)
    P['whh1'] = nrm(ks[7], (N_HEAD, HIDDEN, 4 * HIDDEN), HIDDEN)
    P['b1'] = nrm(ks[8], (N_HEAD, 1, 4 * HIDDEN), 1.0, 0.1)
    P['ws'] = nrm(ks[9], (N_HEAD, 1, HIDDEN), 1.0)
    P['bs'] = nrm(ks[10], (N_HEAD, 1, HIDDEN), 1.0, 0.1)
    P['fc_out_w'] = nrm(ks[11], (N_HEAD * HIDDEN, N_EVENTS), N_HEAD * HIDDEN)
    P['fc_out_b'] = nrm(ks[12], (N_EVENTS,), 1.0, 0.1)
    return P


# ------------------------------------ main -----------------------------------
if __name__ == "__main__":
    key = jax.random.PRNGKey(0)
    kp, kx = jax.random.split(key)
    P = init_params(kp)
    PP = pack_params(P)
    x = jax.random.randint(kx, (B, S, 1), 0, VOCAB, dtype=jnp.int32)

    out = jax.jit(forward_pallas)(x, PP)
    out = jax.block_until_ready(out)

    ref = forward_ref(x, P)
    assert out.shape == (B, N_EVENTS), out.shape
    if not jnp.allclose(out, ref, rtol=2e-3, atol=2e-3):
        raise SystemExit("Pallas output does not match reference")
    print("KERNEL_OK")
</pallas_src>

<mosaic_0001>
module attributes {stable_mosaic.version = 11 : i64} {
  func.func @_fused_forward_kernel(%arg0: i32, %arg1: memref<64x1xi32, #tpu.memory_space<vmem>>, %arg2: memref<8x512xf32, #tpu.memory_space<vmem>>, %arg3: memref<128x512xf32, #tpu.memory_space<vmem>>, %arg4: memref<128x128xf32, #tpu.memory_space<vmem>>, %arg5: memref<1x128xf32, #tpu.memory_space<vmem>>, %arg6: memref<8x128xf32, #tpu.memory_space<vmem>>) attributes {dimension_semantics = [#tpu.dimension_semantics<arbitrary>], iteration_bounds = array<i64: 1>, scalar_prefetch = 0 : i64, scratch_operands = 0 : i64, tpu.core_type = #tpu.core_type<tc>, window_params = [{pipeline_mode = #tpu.pipeline_mode<synchronous>, transform_indices = @transform_0, window_bounds = array<i64: 64, 1>}, {pipeline_mode = #tpu.pipeline_mode<synchronous>, transform_indices = @transform_1, window_bounds = array<i64: 8, 512>}, {pipeline_mode = #tpu.pipeline_mode<synchronous>, transform_indices = @transform_2, window_bounds = array<i64: 128, 512>}, {pipeline_mode = #tpu.pipeline_mode<synchronous>, transform_indices = @transform_3, window_bounds = array<i64: 128, 128>}, {pipeline_mode = #tpu.pipeline_mode<synchronous>, transform_indices = @transform_4, window_bounds = array<i64: 1, 128>}, {pipeline_mode = #tpu.pipeline_mode<synchronous>, transform_indices = @transform_5, window_bounds = array<i64: 8, 128>}]} {
    %c0 = arith.constant 0 : index
    %c0_0 = arith.constant 0 : index
    %0 = vector.load %arg3[%c0, %c0_0] : memref<128x512xf32, #tpu.memory_space<vmem>>, vector<128x512xf32>
    %c0_1 = arith.constant 0 : index
    %c0_2 = arith.constant 0 : index
    %1 = vector.load %arg1[%c0_1, %c0_2] : memref<64x1xi32, #tpu.memory_space<vmem>>, vector<64x1xi32>
    %2 = tpu.iota {dimensions = array<i32: 1>} : vector<64x8xi32>
    %3 = vector.broadcast %1 : vector<64x1xi32> to vector<64x8xi32>
    %4 = arith.cmpi eq, %3, %2 : vector<64x8xi32>
    %5 = arith.extui %4 : vector<64x8xi1> to vector<64x8xi32>
    %6 = arith.sitofp %5 : vector<64x8xi32> to vector<64x8xf32>
    %c0_3 = arith.constant 0 : index
    %c0_4 = arith.constant 0 : index
    %7 = vector.load %arg2[%c0_3, %c0_4] : memref<8x512xf32, #tpu.memory_space<vmem>>, vector<8x512xf32>
    %cst = arith.constant dense<0.000000e+00> : vector<64x512xf32>
    %8 = tpu.matmul %6, %7, %cst {dimension_numbers = #tpu.dot_dimension_numbers<[1], [0], [0], [1], [0, 0, 1, 1], [], []>} : vector<64x8xf32>, vector<8x512xf32>, vector<64x512xf32> -> vector<64x512xf32>
    %cst_5 = arith.constant 0.000000e+00 : f32
    %9 = vector.broadcast %cst_5 : f32 to vector<8x128xf32>
    %10 = tpu.iota {dimensions = array<i32: 1>} : vector<8x128xi32>
    %c64_i32 = arith.constant 64 : i32
    %11 = vector.broadcast %c64_i32 : i32 to vector<8x128xi32>
    %12 = arith.cmpi slt, %10, %11 : vector<8x128xi32>
    %13 = arith.extui %12 : vector<8x128xi1> to vector<8x128xi32>
    %14 = arith.sitofp %13 : vector<8x128xi32> to vector<8x128xf32>
    %15 = vector.extract_strided_slice %8 {offsets = [0, 0], sizes = [8, 512], strides = [1, 1]} : vector<64x512xf32> to vector<8x512xf32>
    %16 = vector.extract_strided_slice %15 {offsets = [0, 0], sizes = [8, 384], strides = [1, 1]} : vector<8x512xf32> to vector<8x384xf32>
    %17 = arith.negf %16 : vector<8x384xf32>
    %18 = math.exp %17 : vector<8x384xf32>
    %cst_6 = arith.constant 1.000000e+00 : f32
    %19 = vector.broadcast %cst_6 : f32 to vector<8x384xf32>
    %20 = arith.addf %19, %18 : vector<8x384xf32>
    %21 = arith.divf %19, %20 : vector<8x384xf32>
    %22 = vector.extract_strided_slice %15 {offsets = [0, 384], sizes = [8, 128], strides = [1, 1]} : vector<8x512xf32> to vector<8x128xf32>
    %23 = math.tanh %22 : vector<8x128xf32>
    %24 = vector.extract_strided_slice %21 {offsets = [0, 0], sizes = [8, 128], strides = [1, 1]} : vector<8x384xf32> to vector<8x128xf32>
    %25 = vector.extract_strided_slice %21 {offsets = [0, 128], sizes = [8, 128], strides = [1, 1]} : vector<8x384xf32> to vector<8x128xf32>
    %26 = vector.extract_strided_slice %21 {offsets = [0, 256], sizes = [8, 128], strides = [1, 1]} : vector<8x384xf32> to vector<8x128xf32>
    %27 = arith.mulf %25, %9 : vector<8x128xf32>
    %28 = arith.mulf %24, %23 : vector<8x128xf32>
    %29 = arith.addf %27, %28 : vector<8x128xf32>
    %30 = math.tanh %29 : vector<8x128xf32>
    %31 = arith.mulf %26, %30 : vector<8x128xf32>
    %32 = arith.mulf %31, %14 : vector<8x128xf32>
    %33 = arith.mulf %29, %14 : vector<8x128xf32>
    %34 = vector.extract_strided_slice %8 {offsets = [8, 0], sizes = [8, 512], strides = [1, 1]} : vector<64x512xf32> to vector<8x512xf32>
    %cst_7 = arith.constant dense<0.000000e+00> : vector<8x512xf32>
    %35 = tpu.matmul %32, %0, %cst_7 {dimension_numbers = #tpu.dot_dimension_numbers<[1], [0], [0], [1], [0, 0, 1, 1], [], []>} : vector<8x128xf32>, vector<128x512xf32>, vector<8x512xf32> -> vector<8x512xf32>
    %36 = arith.addf %34, %35 : vector<8x512xf32>
    %37 = vector.extract_strided_slice %36 {offsets = [0, 0], sizes = [8, 384], strides = [1, 1]} : vector<8x512xf32> to vector<8x384xf32>
    %38 = arith.negf %37 : vector<8x384xf32>
    %39 = math.exp %38 : vector<8x384xf32>
    %cst_8 = arith.constant 1.000000e+00 : f32
    %40 = vector.broadcast %cst_8 : f32 to vector<8x384xf32>
    %41 = arith.addf %40, %39 : vector<8x384xf32>
    %42 = arith.divf %40, %41 : vector<8x384xf32>
    %43 = vector.extract_strided_slice %36 {offsets = [0, 384], sizes = [8, 128], strides = [1, 1]} : vector<8x512xf32> to vector<8x128xf32>
    %44 = math.tanh %43 : vector<8x128xf32>
    %45 = vector.extract_strided_slice %42 {offsets = [0, 0], sizes = [8, 128], strides = [1, 1]} : vector<8x384xf32> to vector<8x128xf32>
    %46 = vector.extract_strided_slice %42 {offsets = [0, 128], sizes = [8, 128], strides = [1, 1]} : vector<8x384xf32> to vector<8x128xf32>
    %47 = vector.extract_strided_slice %42 {offsets = [0, 256], sizes = [8, 128], strides = [1, 1]} : vector<8x384xf32> to vector<8x128xf32>
    %48 = arith.mulf %46, %33 : vector<8x128xf32>
    %49 = arith.mulf %45, %44 : vector<8x128xf32>
    %50 = arith.addf %48, %49 : vector<8x128xf32>
    %51 = math.tanh %50 : vector<8x128xf32>
    %52 = arith.mulf %47, %51 : vector<8x128xf32>
    %53 = vector.extract_strided_slice %8 {offsets = [16, 0], sizes = [8, 512], strides = [1, 1]} : vector<64x512xf32> to vector<8x512xf32>
    %cst_9 = arith.constant dense<0.000000e+00> : vector<8x512xf32>
    %54 = tpu.matmul %52, %0, %cst_9 {dimension_numbers = #tpu.dot_dimension_numbers<[1], [0], [0], [1], [0, 0, 1, 1], [], []>} : vector<8x128xf32>, vector<128x512xf32>, vector<8x512xf32> -> vector<8x512xf32>
    %55 = arith.addf %53, %54 : vector<8x512xf32>
    %56 = vector.extract_strided_slice %55 {offsets = [0, 0], sizes = [8, 384], strides = [1, 1]} : vector<8x512xf32> to vector<8x384xf32>
    %57 = arith.negf %56 : vector<8x384xf32>
    %58 = math.exp %57 : vector<8x384xf32>
    %cst_10 = arith.constant 1.000000e+00 : f32
    %59 = vector.broadcast %cst_10 : f32 to vector<8x384xf32>
    %60 = arith.addf %59, %58 : vector<8x384xf32>
    %61 = arith.divf %59, %60 : vector<8x384xf32>
    %62 = vector.extract_strided_slice %55 {offsets = [0, 384], sizes = [8, 128], strides = [1, 1]} : vector<8x512xf32> to vector<8x128xf32>
    %63 = math.tanh %62 : vector<8x128xf32>
    %64 = vector.extract_strided_slice %61 {offsets = [0, 0], sizes = [8, 128], strides = [1, 1]} : vector<8x384xf32> to vector<8x128xf32>
    %65 = vector.extract_strided_slice %61 {offsets = [0, 128], sizes = [8, 128], strides = [1, 1]} : vector<8x384xf32> to vector<8x128xf32>
    %66 = vector.extract_strided_slice %61 {offsets = [0, 256], sizes = [8, 128], strides = [1, 1]} : vector<8x384xf32> to vector<8x128xf32>
    %67 = arith.mulf %65, %50 : vector<8x128xf32>
    %68 = arith.mulf %64, %63 : vector<8x128xf32>
    %69 = arith.addf %67, %68 : vector<8x128xf32>
    %70 = math.tanh %69 : vector<8x128xf32>
    %71 = arith.mulf %66, %70 : vector<8x128xf32>
    %72 = vector.extract_strided_slice %8 {offsets = [24, 0], sizes = [8, 512], strides = [1, 1]} : vector<64x512xf32> to vector<8x512xf32>
    %cst_11 = arith.constant dense<0.000000e+00> : vector<8x512xf32>
    %73 = tpu.matmul %71, %0, %cst_11 {dimension_numbers = #tpu.dot_dimension_numbers<[1], [0], [0], [1], [0, 0, 1, 1], [], []>} : vector<8x128xf32>, vector<128x512xf32>, vector<8x512xf32> -> vector<8x512xf32>
    %74 = arith.addf %72, %73 : vector<8x512xf32>
    %75 = vector.extract_strided_slice %74 {offsets = [0, 0], sizes = [8, 384], strides = [1, 1]} : vector<8x512xf32> to vector<8x384xf32>
    %76 = arith.negf %75 : vector<8x384xf32>
    %77 = math.exp %76 : vector<8x384xf32>
    %cst_12 = arith.constant 1.000000e+00 : f32
    %78 = vector.broadcast %cst_12 : f32 to vector<8x384xf32>
    %79 = arith.addf %78, %77 : vector<8x384xf32>
    %80 = arith.divf %78, %79 : vector<8x384xf32>
    %81 = vector.extract_strided_slice %74 {offsets = [0, 384], sizes = [8, 128], strides = [1, 1]} : vector<8x512xf32> to vector<8x128xf32>
    %82 = math.tanh %81 : vector<8x128xf32>
    %83 = vector.extract_strided_slice %80 {offsets = [0, 0], sizes = [8, 128], strides = [1, 1]} : vector<8x384xf32> to vector<8x128xf32>
    %84 = vector.extract_strided_slice %80 {offsets = [0, 128], sizes = [8, 128], strides = [1, 1]} : vector<8x384xf32> to vector<8x128xf32>
    %85 = vector.extract_strided_slice %80 {offsets = [0, 256], sizes = [8, 128], strides = [1, 1]} : vector<8x384xf32> to vector<8x128xf32>
    %86 = arith.mulf %84, %69 : vector<8x128xf32>
    %87 = arith.mulf %83, %82 : vector<8x128xf32>
    %88 = arith.addf %86, %87 : vector<8x128xf32>
    %89 = math.tanh %88 : vector<8x128xf32>
    %90 = arith.mulf %85, %89 : vector<8x128xf32>
    %91 = vector.extract_strided_slice %8 {offsets = [32, 0], sizes = [8, 512], strides = [1, 1]} : vector<64x512xf32> to vector<8x512xf32>
    %cst_13 = arith.constant dense<0.000000e+00> : vector<8x512xf32>
    %92 = tpu.matmul %90, %0, %cst_13 {dimension_numbers = #tpu.dot_dimension_numbers<[1], [0], [0], [1], [0, 0, 1, 1], [], []>} : vector<8x128xf32>, vector<128x512xf32>, vector<8x512xf32> -> vector<8x512xf32>
    %93 = arith.addf %91, %92 : vector<8x512xf32>
    %94 = vector.extract_strided_slice %93 {offsets = [0, 0], sizes = [8, 384], strides = [1, 1]} : vector<8x512xf32> to vector<8x384xf32>
    %95 = arith.negf %94 : vector<8x384xf32>
    %96 = math.exp %95 : vector<8x384xf32>
    %cst_14 = arith.constant 1.000000e+00 : f32
    %97 = vector.broadcast %cst_14 : f32 to vector<8x384xf32>
    %98 = arith.addf %97, %96 : vector<8x384xf32>
    %99 = arith.divf %97, %98 : vector<8x384xf32>
    %100 = vector.extract_strided_slice %93 {offsets = [0, 384], sizes = [8, 128], strides = [1, 1]} : vector<8x512xf32> to vector<8x128xf32>
    %101 = math.tanh %100 : vector<8x128xf32>
    %102 = vector.extract_strided_slice %99 {offsets = [0, 0], sizes = [8, 128], strides = [1, 1]} : vector<8x384xf32> to vector<8x128xf32>
    %103 = vector.extract_strided_slice %99 {offsets = [0, 128], sizes = [8, 128], strides = [1, 1]} : vector<8x384xf32> to vector<8x128xf32>
    %104 = vector.extract_strided_slice %99 {offsets = [0, 256], sizes = [8, 128], strides = [1, 1]} : vector<8x384xf32> to vector<8x128xf32>
    %105 = arith.mulf %103, %88 : vector<8x128xf32>
    %106 = arith.mulf %102, %101 : vector<8x128xf32>
    %107 = arith.addf %105, %106 : vector<8x128xf32>
    %108 = math.tanh %107 : vector<8x128xf32>
    %109 = arith.mulf %104, %108 : vector<8x128xf32>
    %110 = vector.extract_strided_slice %8 {offsets = [40, 0], sizes = [8, 512], strides = [1, 1]} : vector<64x512xf32> to vector<8x512xf32>
    %cst_15 = arith.constant dense<0.000000e+00> : vector<8x512xf32>
    %111 = tpu.matmul %109, %0, %cst_15 {dimension_numbers = #tpu.dot_dimension_numbers<[1], [0], [0], [1], [0, 0, 1, 1], [], []>} : vector<8x128xf32>, vector<128x512xf32>, vector<8x512xf32> -> vector<8x512xf32>
    %112 = arith.addf %110, %111 : vector<8x512xf32>
    %113 = vector.extract_strided_slice %112 {offsets = [0, 0], sizes = [8, 384], strides = [1, 1]} : vector<8x512xf32> to vector<8x384xf32>
    %114 = arith.negf %113 : vector<8x384xf32>
    %115 = math.exp %114 : vector<8x384xf32>
    %cst_16 = arith.constant 1.000000e+00 : f32
    %116 = vector.broadcast %cst_16 : f32 to vector<8x384xf32>
    %117 = arith.addf %116, %115 : vector<8x384xf32>
    %118 = arith.divf %116, %117 : vector<8x384xf32>
    %119 = vector.extract_strided_slice %112 {offsets = [0, 384], sizes = [8, 128], strides = [1, 1]} : vector<8x512xf32> to vector<8x128xf32>
    %120 = math.tanh %119 : vector<8x128xf32>
    %121 = vector.extract_strided_slice %118 {offsets = [0, 0], sizes = [8, 128], strides = [1, 1]} : vector<8x384xf32> to vector<8x128xf32>
    %122 = vector.extract_strided_slice %118 {offsets = [0, 128], sizes = [8, 128], strides = [1, 1]} : vector<8x384xf32> to vector<8x128xf32>
    %123 = vector.extract_strided_slice %118 {offsets = [0, 256], sizes = [8, 128], strides = [1, 1]} : vector<8x384xf32> to vector<8x128xf32>
    %124 = arith.mulf %122, %107 : vector<8x128xf32>
    %125 = arith.mulf %121, %120 : vector<8x128xf32>
    %126 = arith.addf %124, %125 : vector<8x128xf32>
    %127 = math.tanh %126 : vector<8x128xf32>
    %128 = arith.mulf %123, %127 : vector<8x128xf32>
    %129 = vector.extract_strided_slice %8 {offsets = [48, 0], sizes = [8, 512], strides = [1, 1]} : vector<64x512xf32> to vector<8x512xf32>
    %cst_17 = arith.constant dense<0.000000e+00> : vector<8x512xf32>
    %130 = tpu.matmul %128, %0, %cst_17 {dimension_numbers = #tpu.dot_dimension_numbers<[1], [0], [0], [1], [0, 0, 1, 1], [], []>} : vector<8x128xf32>, vector<128x512xf32>, vector<8x512xf32> -> vector<8x512xf32>
    %131 = arith.addf %129, %130 : vector<8x512xf32>
    %132 = vector.extract_strided_slice %131 {offsets = [0, 0], sizes = [8, 384], strides = [1, 1]} : vector<8x512xf32> to vector<8x384xf32>
    %133 = arith.negf %132 : vector<8x384xf32>
    %134 = math.exp %133 : vector<8x384xf32>
    %cst_18 = arith.constant 1.000000e+00 : f32
    %135 = vector.broadcast %cst_18 : f32 to vector<8x384xf32>
    %136 = arith.addf %135, %134 : vector<8x384xf32>
    %137 = arith.divf %135, %136 : vector<8x384xf32>
    %138 = vector.extract_strided_slice %131 {offsets = [0, 384], sizes = [8, 128], strides = [1, 1]} : vector<8x512xf32> to vector<8x128xf32>
    %139 = math.tanh %138 : vector<8x128xf32>
    %140 = vector.extract_strided_slice %137 {offsets = [0, 0], sizes = [8, 128], strides = [1, 1]} : vector<8x384xf32> to vector<8x128xf32>
    %141 = vector.extract_strided_slice %137 {offsets = [0, 128], sizes = [8, 128], strides = [1, 1]} : vector<8x384xf32> to vector<8x128xf32>
    %142 = vector.extract_strided_slice %137 {offsets = [0, 256], sizes = [8, 128], strides = [1, 1]} : vector<8x384xf32> to vector<8x128xf32>
    %143 = arith.mulf %141, %126 : vector<8x128xf32>
    %144 = arith.mulf %140, %139 : vector<8x128xf32>
    %145 = arith.addf %143, %144 : vector<8x128xf32>
    %146 = math.tanh %145 : vector<8x128xf32>
    %147 = arith.mulf %142, %146 : vector<8x128xf32>
    %148 = vector.extract_strided_slice %8 {offsets = [56, 0], sizes = [8, 512], strides = [1, 1]} : vector<64x512xf32> to vector<8x512xf32>
    %cst_19 = arith.constant dense<0.000000e+00> : vector<8x512xf32>
    %149 = tpu.matmul %147, %0, %cst_19 {dimension_numbers = #tpu.dot_dimension_numbers<[1], [0], [0], [1], [0, 0, 1, 1], [], []>} : vector<8x128xf32>, vector<128x512xf32>, vector<8x512xf32> -> vector<8x512xf32>
    %150 = arith.addf %148, %149 : vector<8x512xf32>
    %151 = vector.extract_strided_slice %150 {offsets = [0, 0], sizes = [8, 384], strides = [1, 1]} : vector<8x512xf32> to vector<8x384xf32>
    %152 = arith.negf %151 : vector<8x384xf32>
    %153 = math.exp %152 : vector<8x384xf32>
    %cst_20 = arith.constant 1.000000e+00 : f32
    %154 = vector.broadcast %cst_20 : f32 to vector<8x384xf32>
    %155 = arith.addf %154, %153 : vector<8x384xf32>
    %156 = arith.divf %154, %155 : vector<8x384xf32>
    %157 = vector.extract_strided_slice %150 {offsets = [0, 384], sizes = [8, 128], strides = [1, 1]} : vector<8x512xf32> to vector<8x128xf32>
    %158 = math.tanh %157 : vector<8x128xf32>
    %159 = vector.extract_strided_slice %156 {offsets = [0, 0], sizes = [8, 128], strides = [1, 1]} : vector<8x384xf32> to vector<8x128xf32>
    %160 = vector.extract_strided_slice %156 {offsets = [0, 128], sizes = [8, 128], strides = [1, 1]} : vector<8x384xf32> to vector<8x128xf32>
    %161 = vector.extract_strided_slice %156 {offsets = [0, 256], sizes = [8, 128], strides = [1, 1]} : vector<8x384xf32> to vector<8x128xf32>
    %162 = arith.mulf %160, %145 : vector<8x128xf32>
    %163 = arith.mulf %159, %158 : vector<8x128xf32>
    %164 = arith.addf %162, %163 : vector<8x128xf32>
    %165 = math.tanh %164 : vector<8x128xf32>
    %166 = arith.mulf %161, %165 : vector<8x128xf32>
    %167 = vector.extract_strided_slice %8 {offsets = [56, 0], sizes = [8, 512], strides = [1, 1]} : vector<64x512xf32> to vector<8x512xf32>
    %cst_21 = arith.constant dense<0.000000e+00> : vector<8x512xf32>
    %168 = tpu.matmul %166, %0, %cst_21 {dimension_numbers = #tpu.dot_dimension_numbers<[1], [0], [0], [1], [0, 0, 1, 1], [], []>} : vector<8x128xf32>, vector<128x512xf32>, vector<8x512xf32> -> vector<8x512xf32>
    %169 = arith.addf %167, %168 : vector<8x512xf32>
    %170 = vector.extract_strided_slice %169 {offsets = [0, 0], sizes = [8, 384], strides = [1, 1]} : vector<8x512xf32> to vector<8x384xf32>
    %171 = arith.negf %170 : vector<8x384xf32>
    %172 = math.exp %171 : vector<8x384xf32>
    %cst_22 = arith.constant 1.000000e+00 : f32
    %173 = vector.broadcast %cst_22 : f32 to vector<8x384xf32>
    %174 = arith.addf %173, %172 : vector<8x384xf32>
    %175 = arith.divf %173, %174 : vector<8x384xf32>
    %176 = vector.extract_strided_slice %169 {offsets = [0, 384], sizes = [8, 128], strides = [1, 1]} : vector<8x512xf32> to vector<8x128xf32>
    %177 = math.tanh %176 : vector<8x128xf32>
    %178 = vector.extract_strided_slice %175 {offsets = [0, 0], sizes = [8, 128], strides = [1, 1]} : vector<8x384xf32> to vector<8x128xf32>
    %179 = vector.extract_strided_slice %175 {offsets = [0, 128], sizes = [8, 128], strides = [1, 1]} : vector<8x384xf32> to vector<8x128xf32>
    %180 = vector.extract_strided_slice %175 {offsets = [0, 256], sizes = [8, 128], strides = [1, 1]} : vector<8x384xf32> to vector<8x128xf32>
    %181 = arith.mulf %179, %164 : vector<8x128xf32>
    %182 = arith.mulf %178, %177 : vector<8x128xf32>
    %183 = arith.addf %181, %182 : vector<8x128xf32>
    %184 = math.tanh %183 : vector<8x128xf32>
    %185 = arith.mulf %180, %184 : vector<8x128xf32>
    %c0_23 = arith.constant 0 : index
    %c0_24 = arith.constant 0 : index
    %186 = vector.load %arg4[%c0_23, %c0_24] : memref<128x128xf32, #tpu.memory_space<vmem>>, vector<128x128xf32>
    %cst_25 = arith.constant dense<0.000000e+00> : vector<8x128xf32>
    %187 = tpu.matmul %185, %186, %cst_25 {dimension_numbers = #tpu.dot_dimension_numbers<[1], [0], [0], [1], [0, 0, 1, 1], [], []>} : vector<8x128xf32>, vector<128x128xf32>, vector<8x128xf32> -> vector<8x128xf32>
    %c0_26 = arith.constant 0 : index
    %c0_27 = arith.constant 0 : index
    %188 = vector.load %arg5[%c0_26, %c0_27] : memref<1x128xf32, #tpu.memory_space<vmem>>, vector<1x128xf32>
    %189 = vector.broadcast %188 : vector<1x128xf32> to vector<8x128xf32>
    %190 = arith.addf %187, %189 : vector<8x128xf32>
    %c0_28 = arith.constant 0 : index
    %c0_29 = arith.constant 0 : index
    %191 = vector.load %arg6[%c0_28, %c0_29] : memref<8x128xf32, #tpu.memory_space<vmem>>, vector<8x128xf32>
    tpu.vector_store %arg6[%c0_28, %c0_29], %190 {strides = array<i32>} : memref<8x128xf32, #tpu.memory_space<vmem>>, vector<8x128xf32>,
    return
  }
  func.func @transform_0(%arg0: i32) -> (i32, i32) {
    %c0_i32 = arith.constant 0 : i32
    %c0_i32_0 = arith.constant 0 : i32
    %c0_i32_1 = arith.constant 0 : i32
    return %c0_i32, %c0_i32_0 : i32, i32
  }
  func.func @transform_1(%arg0: i32) -> (i32, i32) {
    %c0_i32 = arith.constant 0 : i32
    %c0_i32_0 = arith.constant 0 : i32
    %c0_i32_1 = arith.constant 0 : i32
    return %c0_i32, %c0_i32_0 : i32, i32
  }
  func.func @transform_2(%arg0: i32) -> (i32, i32) {
    %c0_i32 = arith.constant 0 : i32
    %c0_i32_0 = arith.constant 0 : i32
    %c0_i32_1 = arith.constant 0 : i32
    return %c0_i32, %c0_i32_0 : i32, i32
  }
  func.func @transform_3(%arg0: i32) -> (i32, i32) {
    %c0_i32 = arith.constant 0 : i32
    %c0_i32_0 = arith.constant 0 : i32
    %c0_i32_1 = arith.constant 0 : i32
    return %c0_i32, %c0_i32_0 : i32, i32
  }
  func.func @transform_4(%arg0: i32) -> (i32, i32) {
    %c0_i32 = arith.constant 0 : i32
    %c0_i32_0 = arith.constant 0 : i32
    %c0_i32_1 = arith.constant 0 : i32
    return %c0_i32, %c0_i32_0 : i32, i32
  }
  func.func @transform_5(%arg0: i32) -> (i32, i32) {
    %c0_i32 = arith.constant 0 : i32
    %c0_i32_0 = arith.constant 0 : i32
    %c0_i32_1 = arith.constant 0 : i32
    return %c0_i32, %c0_i32_0 : i32, i32
  }
}

</mosaic_0001>

<bundles_post_ra>
// kernel: forward_pallas.1
= control target key start
LH: loop header
LB: loop body
LE: loop exit
PB: predicated region body
PF: predicated region fallthrough
CT: control target
= control target key end

     0   :  { %10 = vsyncpa [#allocation3], 0  ;;  %s3325_s0 = inlined_call_operand.vmem [shape: s32[64,1], index: 0, kind: input, shape index: {}]   ;;  %s3326_s1 = inlined_call_operand.vmem [shape: f32[8,512], index: 1, kind: input, shape index: {}]   ;;  %s3327_s2 = inlined_call_operand.hbm [shape: f32[128,512], index: 2, kind: input, shape index: {}]   ;;  %s3328_s3 = inlined_call_operand.hbm [shape: f32[128,128], index: 3, kind: input, shape index: {}]   ;;  %s3329_s4 = inlined_call_operand.vmem [shape: f32[1,128], index: 4, kind: input, shape index: {}]   ;;  %s3330_s5 = inlined_call_operand.vmem [shape: f32[8,128], index: 5, kind: output, shape index: {}]  }
   0x1   :  { %11 = vsyncpa [#allocation5], 0  ;;  %s2783_s18 = smov [#allocation2]   ;;  %s2735_s22 = scalar_lea.hbm %s3327_s2, 8192 }
   0x2   :  { %s21_s19 = sshll.u32 %s2783_s18, 4  ;;  %p2736_p0 = scmp.ne.s32.totalorder %s3327_s2, %s2735_s22  ;;  %s22_s19 = int_to_ptr.vmem [resolvable:$true] %s21_s19 }
   0x3   :  { %p2739_p1 = scmp.lt.u32.totalorder %s2735_s22, %s3327_s2 }
   0x5   :  { %p2741_p2 = pnand %p2739_p1, %p2736_p0 }
   0x7   :  { %2744 = shalt.err (!%p2741_p2)
}
   0x8   :  { %s2745_s27 = scalar_lea.vmem %s22_s19, 8192  ;;  %p2750_p4 = scmp.lt.s32.totalorder %s22_s19, %s22_s19 }
   0x9   :  { %p2746_p3 = scmp.ne.s32.totalorder %s22_s19, %s2745_s27  ;;  %p2751_p5 = scmp.lt.s32.totalorder %s2745_s27, %s2745_s27 }
   0xb   :  { %p2752_p6 = por %p2751_p5, %p2750_p4 }
   0xd   :  { %p2753_p7 = pnand %p2752_p6, %p2746_p3 }
   0xf   :  { %2756 = shalt.err (!%p2753_p7)
}
  0x10   :  { %s2784_s28 = smov 512   ;;  %s2785_s29 = smov 32  }
  0x11   :  { %27 = dma.hbm_to_vmem [thread:$0]  %s3327_s2, 8192, %s22_s19, [#allocation3], %s2784_s28, %s2784_s28, %s2785_s29  }
  0x12   :  { %s2786_s7 = smov [#allocation4]   ;;  %s2757_s11 = scalar_lea.hbm %s3328_s3, 2048 }
  0x13   :  { %s33_s8 = sshll.u32 %s2786_s7, 4  ;;  %p2758_p8 = scmp.ne.s32.totalorder %s3328_s3, %s2757_s11  ;;  %s34_s8 = int_to_ptr.vmem [resolvable:$true] %s33_s8 }
  0x14   :  { %p2761_p9 = scmp.lt.u32.totalorder %s2757_s11, %s3328_s3 }
  0x16   :  { %p2763_p10 = pnand %p2761_p9, %p2758_p8 }
  0x18   :  { %2766 = shalt.err (!%p2763_p10)
}
  0x19   :  { %s2767_s16 = scalar_lea.vmem %s34_s8, 2048  ;;  %p2772_p12 = scmp.lt.s32.totalorder %s34_s8, %s34_s8 }
  0x1a   :  { %p2768_p11 = scmp.ne.s32.totalorder %s34_s8, %s2767_s16  ;;  %p2773_p13 = scmp.lt.s32.totalorder %s2767_s16, %s2767_s16 }
  0x1c   :  { %p2774_p0 = por %p2773_p13, %p2772_p12 }
  0x1e   :  { %p2775_p1 = pnand %p2774_p0, %p2768_p11 }
  0x20   :  { %2778 = shalt.err (!%p2775_p1)
}
  0x21   :  { %s2787_s2 = smov 128   ;;  %s2788_s17 = smov 8  }
  0x22   :  { %39 = dma.hbm_to_vmem [thread:$0]  %s3328_s3, 2048, %s34_s8, [#allocation5], %s2787_s2, %s2787_s2, %s2788_s17  }
  0x23   :  { %2779 = dma.done.wait [#allocation3], 8192  }
  0x24   :  { %2780 = vsyncadd [#allocation3], 4294959104 }
  0x25   :  { %2781 = dma.done.wait [#allocation5], 2048  }
  0x26   :  { %2782 = vsyncadd [#allocation5], 4294965248  ;;  %v2789_v0 = vmov 0   ;;  %v2790_v1 = vmov 0.0   ;;  %v112_v2 = vld [vmem:[%s3325_s0] sm:$0xff]  ;;  %v114_v3 = vld [vmem:[%s3325_s0 + $0x10] sm:$0xff]  ;;  %v120_v14 = vlaneseq }
  0x27   :  { %2589 = vset.pattern.permute.xlu0 %v2789_v0  ;;  %2590 = vset.pattern.permute.xlu1 %v2789_v0  ;;  %v113_v4 = vld [vmem:[%s3325_s0 + $0x8] sm:$0xff]  ;;  %v115_v5 = vld [vmem:[%s3325_s0 + $0x18] sm:$0xff]  ;;  %v170_v8 = vld [vmem:[%s3326_s1] sm:$0xff]  ;;  %vm174_vm0 = vcmask 64512   ;;  %vm2792_vm10 = vmmov 0  }
  0x28   :  { %263 = vmatprep.mubr.f32.mxu0 %v2790_v1  ;;  %376 = vmatprep.mubr.f32.mxu1 %v2790_v1  ;;  %v171_v6 = vld [vmem:[%s3326_s1 + $0x8] sm:$0xff]  ;;  %v173_v7 = vld [vmem:[%s3326_s1 + $0x18] sm:$0xff]  ;;  %v172_v9 = vld [vmem:[%s3326_s1 + $0x10] sm:$0xff]  ;;  %v2885_v15 = vand.u32 127, %v120_v14 }
  0x29   :  { %123 = vperm.xlu0 %2589, %v112_v2   ;;  %129 = vperm.xlu1 %2590, %v114_v3   ;;  %v116_v10 = vld [vmem:[%s3325_s0 + $0x20] sm:$0xff]  ;;  %v117_v11 = vld [vmem:[%s3325_s0 + $0x28] sm:$0xff]  ;;  %v118_v12 = vld [vmem:[%s3325_s0 + $0x30] sm:$0xff] }
  0x2a   :  { %199 = vmatprep.subr.mxu0 %v171_v6  ;;  %312 = vmatprep.subr.mxu1 %v173_v7  ;;  %v119_v13 = vld [vmem:[%s3325_s0 + $0x38] sm:$0xff]  ;;  %v49_v30 = vld [vmem:[#allocation2 + $0x8] sm:$0xff]  ;;  %v48_v34 = vld [vmem:[#allocation2] sm:$0xff]  ;;  %vm425_vm9 = vcmp.lt.s32.totalorder %v2885_v15, 64 }
  0x2b   :  { %200 = vmatpush1.msra.mxu0 %v170_v8  ;;  %313 = vmatpush1.msra.mxu1 %v172_v9  ;;  %v53_v31 = vld [vmem:[#allocation2 + $0x28] sm:$0xff]  ;;  %v51_v32 = vld [vmem:[#allocation2 + $0x18] sm:$0xff]  ;;  %v52_v35 = vld [vmem:[#allocation2 + $0x20] sm:$0xff] }
  0x2c   :  { %v2929_v33 = vpack.c.bf16 %v53_v31, %v49_v30  ;;  %v55_v36 = vld [vmem:[#allocation2 + $0x38] sm:$0xff]  ;;  %v2931_v37 = vpack.c.bf16 %v52_v35, %v48_v34  ;;  %v50_v39 = vld [vmem:[#allocation2 + $0x10] sm:$0xff]  ;;  %v57_v42 = vld [vmem:[#allocation2 + $0x48] sm:$0xff] }
  0x2d   :  { %126 = vperm.xlu0 %2589, %v113_v4   ;;  %132 = vperm.xlu1 %2590, %v115_v5   ;;  %v2933_v38 = vpack.c.bf16 %v55_v36, %v51_v32  ;;  %v54_v40 = vld [vmem:[#allocation2 + $0x30] sm:$0xff]  ;;  %v61_v43 = vld [vmem:[#allocation2 + $0x68] sm:$0xff]  ;;  %v59_v44 = vld [vmem:[#allocation2 + $0x58] sm:$0xff] }
  0x2e   :  { %2020 = vmatprep.subr.bf16.mxu0 %v2929_v33  ;;  %v2936_v41 = vpack.c.bf16 %v54_v40, %v50_v39  ;;  %v2941_v45 = vpack.c.bf16 %v61_v43, %v57_v42  ;;  %v56_v46 = vld [vmem:[#allocation2 + $0x40] sm:$0xff]  ;;  %v63_v48 = vld [vmem:[#allocation2 + $0x78] sm:$0xff]  ;;  %v58_v51 = vld [vmem:[#allocation2 + $0x50] sm:$0xff] }
  0x2f   :  { %2052 = vmatprep.subr.bf16.mxu1 %v2933_v38  ;;  %v60_v47 = vld [vmem:[#allocation2 + $0x60] sm:$0xff]  ;;  %v2945_v50 = vpack.c.bf16 %v63_v48, %v59_v44  ;;  %v62_v52 = vld [vmem:[#allocation2 + $0x70] sm:$0xff]  ;;  %v65_v55 = vld [vmem:[#allocation2 + $0x88] sm:$0xff] }
  0x30   :  { %v2943_v49 = vpack.c.bf16 %v60_v47, %v56_v46  ;;  %v2948_v54 = vpack.c.bf16 %v62_v52, %v58_v51  ;;  %v69_v56 = vld [vmem:[#allocation2 + $0xa8] sm:$0xff]  ;;  %v67_v57 = vld [vmem:[#allocation2 + $0x98] sm:$0xff]  ;;  %v64_v60 = vld [vmem:[#allocation2 + $0x80] sm:$0xff] }
  0x31   :  { %135 = vperm.xlu0 %2589, %v116_v10   ;;  %138 = vperm.xlu1 %2590, %v117_v11   ;;  %v2955_v59 = vpack.c.bf16 %v69_v56, %v65_v55  ;;  %v68_v61 = vld [vmem:[#allocation2 + $0xa0] sm:$0xff]  ;;  %v71_v62 = vld [vmem:[#allocation2 + $0xb8] sm:$0xff]  ;;  %v66_v2 = vld [vmem:[#allocation2 + $0x90] sm:$0xff] }
  0x32   :  { %v2959_v63 = vpack.c.bf16 %v68_v61, %v64_v60  ;;  %v2961_v0 = vpack.c.bf16 %v71_v62, %v67_v57  ;;  %v70_v3 = vld [vmem:[#allocation2 + $0xb0] sm:$0xff]  ;;  %v73_v5 = vld [vmem:[#allocation2 + $0xc8] sm:$0xff]  ;;  %v75_v7 = vld [vmem:[#allocation2 + $0xd8] sm:$0xff] }
  0x33   :  { %v2964_v4 = vpack.c.bf16 %v70_v3, %v66_v2  ;;  %v77_v6 = vld [vmem:[#allocation2 + $0xe8] sm:$0xff]  ;;  %v72_v9 = vld [vmem:[#allocation2 + $0xc0] sm:$0xff]  ;;  %v79_v11 = vld [vmem:[#allocation2 + $0xf8] sm:$0xff] }
  0x34   :  { %v2970_v8 = vpack.c.bf16 %v77_v6, %v73_v5  ;;  %v76_v10 = vld [vmem:[#allocation2 + $0xe0] sm:$0xff]  ;;  %v74_v14 = vld [vmem:[#allocation2 + $0xd0] sm:$0xff]  ;;  %v89_v30 = vld [vmem:[#allocation2 + $0x148] sm:$0xff] }
  0x35   :  { %141 = vperm.xlu0 %2589, %v118_v12   ;;  %144 = vperm.xlu1 %2590, %v119_v13   ;;  %v2973_v12 = vpack.c.bf16 %v76_v10, %v72_v9  ;;  %v2975_v13 = vpack.c.bf16 %v79_v11, %v75_v7  ;;  %v93_v31 = vld [vmem:[#allocation2 + $0x168] sm:$0xff]  ;;  %v88_v32 = vld [vmem:[#allocation2 + $0x140] sm:$0xff]  ;;  %v91_v36 = vld [vmem:[#allocation2 + $0x158] sm:$0xff] }
  0x36   :  { %v2995_v34 = vpack.c.bf16 %v93_v31, %v89_v30  ;;  %v92_v35 = vld [vmem:[#allocation2 + $0x160] sm:$0xff]  ;;  %v95_v39 = vld [vmem:[#allocation2 + $0x178] sm:$0xff]  ;;  %v90_v43 = vld [vmem:[#allocation2 + $0x150] sm:$0xff] }
  0x37   :  { %v2997_v40 = vpack.c.bf16 %v92_v35, %v88_v32  ;;  %v2999_v42 = vpack.c.bf16 %v95_v39, %v91_v36  ;;  %v94_v44 = vld [vmem:[#allocation2 + $0x170] sm:$0xff]  ;;  %v97_v46 = vld [vmem:[#allocation2 + $0x188] sm:$0xff]  ;;  %v96_v51 = vld [vmem:[#allocation2 + $0x180] sm:$0xff] }
  0x38   :  { %v3002_v47 = vpack.c.bf16 %v94_v44, %v90_v43  ;;  %v101_v48 = vld [vmem:[#allocation2 + $0x1a8] sm:$0xff]  ;;  %v100_v52 = vld [vmem:[#allocation2 + $0x1a0] sm:$0xff]  ;;  %v99_v56 = vld [vmem:[#allocation2 + $0x198] sm:$0xff] }
  0x39   :  { %v3008_v55 = vpack.c.bf16 %v100_v52, %v96_v51  ;;  %v103_v57 = vld [vmem:[#allocation2 + $0x1b8] sm:$0xff]  ;;  %v102_v61 = vld [vmem:[#allocation2 + $0x1b0] sm:$0xff]  ;;  %v105_v62 = vld [vmem:[#allocation2 + $0x1c8] sm:$0xff] }
  0x3a   :  { %v3011_v60 = vpack.c.bf16 %v103_v57, %v99_v56  ;;  %v109_v2 = vld [vmem:[#allocation2 + $0x1e8] sm:$0xff]  ;;  %v104_v6 = vld [vmem:[#allocation2 + $0x1c0] sm:$0xff]  ;;  %v107_v9 = vld [vmem:[#allocation2 + $0x1d8] sm:$0xff]  ;;  %v1938_v56 = vsel %vm425_vm9, 1.0, %v2790_v1 }
  0x3b   :  { %v3016_v5 = vpack.c.bf16 %v109_v2, %v105_v62  ;;  %v108_v7 = vld [vmem:[#allocation2 + $0x1e0] sm:$0xff]  ;;  %v111_v10 = vld [vmem:[#allocation2 + $0x1f8] sm:$0xff]  ;;  %v106_v11 = vld [vmem:[#allocation2 + $0x1d0] sm:$0xff] }
  0xa8   :  { %v124_v16 = vpop.permute.xlu0 %123  ;;  %v130_v17 = vpop.permute.xlu1 %129 }
  0xa9   :  { %vm146_vm1 = vcmp.eq.s32.totalorder %v124_v16, %v2885_v15  ;;  %vm148_vm3 = vcmp.eq.s32.totalorder %v130_v17, %v2885_v15  ;;  %v78_v16 = vld [vmem:[#allocation2 + $0xf0] sm:$0xff] }
  0xaa   :  { %v1914_v18 = vsel %vm146_vm1, 1.0, %v2790_v1  ;;  %v1916_v22 = vsel %vm148_vm3, 1.0, %v2790_v1  ;;  %v2978_v17 = vpack.c.bf16 %v78_v16, %v74_v14  ;;  %v110_v14 = vld [vmem:[#allocation2 + $0x1f0] sm:$0xff]  ;;  %v3020_v16 = vpack.c.bf16 %v108_v7, %v104_v6 }
  0xab   :  { %1922 = vmatmul.mubr.msk.f32.vlgmr.msra.gmra.mrb[0].mxu0 %vm174_vm0, %v1914_v18  ;;  %1930 = vmatmul.mubr.msk.f32.vlgmr.msra.gmra.mrb[0].mxu1 %vm174_vm0, %v1914_v18  ;;  %v81_v18 = vld [vmem:[#allocation2 + $0x108] sm:$0xff] }
  0xac   :  { %v127_v19 = vpop.permute.xlu0 %126  ;;  %269 = vmatprep.mubr.f32.mxu0 %v2790_v1  ;;  %382 = vmatprep.mubr.f32.mxu1 %v2790_v1  ;;  %v133_v21 = vpop.permute.xlu1 %132 }
  0xad   :  { %vm147_vm2 = vcmp.eq.s32.totalorder %v127_v19, %v2885_v15  ;;  %vm149_vm4 = vcmp.eq.s32.totalorder %v133_v21, %v2885_v15  ;;  %2022 = vmatpush1.bf16.msra.mxu0 %v2931_v37  ;;  %2054 = vmatpush1.bf16.msra.mxu1 %v2936_v41  ;;  %v85_v19 = vld [vmem:[#allocation2 + $0x128] sm:$0xff] }
  0xae   :  { %v1915_v20 = vsel %vm147_vm2, 1.0, %v2790_v1  ;;  %v1917_v24 = vsel %vm149_vm4, 1.0, %v2790_v1  ;;  %2024 = vmatprep.subr.bf16.mxu0 %v2941_v45  ;;  %2056 = vmatprep.subr.bf16.mxu1 %v2945_v50  ;;  %v2983_v21 = vpack.c.bf16 %v85_v19, %v81_v18  ;;  %v3022_v18 = vpack.c.bf16 %v111_v10, %v107_v9 }
  0xaf   :  { %1923 = vmatmul.mubr.msk.f32.gmra.mrb[2].mxu0 %vm174_vm0, %v1915_v20  ;;  %1931 = vmatmul.mubr.msk.f32.gmra.mrb[2].mxu1 %vm174_vm0, %v1915_v20  ;;  %v83_v20 = vld [vmem:[#allocation2 + $0x118] sm:$0xff]  ;;  %v3026_v19 = vpack.c.bf16 %v110_v14, %v106_v11 }
  0xb0   :  { %275 = vmatprep.mubr.f32.mxu0 %v2790_v1  ;;  %388 = vmatprep.mubr.f32.mxu1 %v2790_v1  ;;  %v136_v23 = vpop.permute.xlu0 %135  ;;  %v139_v25 = vpop.permute.xlu1 %138 }
  0xb1   :  { %vm150_vm5 = vcmp.eq.s32.totalorder %v136_v23, %v2885_v15  ;;  %vm151_vm6 = vcmp.eq.s32.totalorder %v139_v25, %v2885_v15  ;;  %2026 = vmatpush1.bf16.msra.mxu0 %v2943_v49  ;;  %2058 = vmatpush1.bf16.msra.mxu1 %v2948_v54  ;;  %v84_v23 = vld [vmem:[#allocation2 + $0x120] sm:$0xff] }
  0xb2   :  { %v1918_v26 = vsel %vm150_vm5, 1.0, %v2790_v1  ;;  %v1919_v28 = vsel %vm151_vm6, 1.0, %v2790_v1  ;;  %2028 = vmatprep.subr.bf16.mxu0 %v2955_v59  ;;  %2060 = vmatprep.subr.bf16.mxu1 %v2961_v0 }
  0xb3   :  { %1924 = vmatmul.mubr.msk.f32.gmra.mrb[4].mxu0 %vm174_vm0, %v1916_v22  ;;  %1932 = vmatmul.mubr.msk.f32.gmra.mrb[4].mxu1 %vm174_vm0, %v1916_v22  ;;  %v80_v22 = vld [vmem:[#allocation2 + $0x100] sm:$0xff] }
  0xb4   :  { %281 = vmatprep.mubr.f32.mxu0 %v2790_v1  ;;  %394 = vmatprep.mubr.f32.mxu1 %v2790_v1  ;;  %v142_v27 = vpop.permute.xlu0 %141  ;;  %v145_v53 = vpop.permute.xlu1 %144  ;;  %v2985_v25 = vpack.c.bf16 %v84_v23, %v80_v22 }
  0xb5   :  { %vm152_vm7 = vcmp.eq.s32.totalorder %v142_v27, %v2885_v15  ;;  %vm153_vm8 = vcmp.eq.s32.totalorder %v145_v53, %v2885_v15  ;;  %2030 = vmatpush1.bf16.msra.mxu0 %v2959_v63  ;;  %2062 = vmatpush1.bf16.msra.mxu1 %v2964_v4  ;;  %v82_v27 = vld [vmem:[#allocation2 + $0x110] sm:$0xff]  ;;  %v3006_v53 = vpack.c.bf16 %v101_v48, %v97_v46 }
  0xb6   :  { %v1920_v29 = vsel %vm152_vm7, 1.0, %v2790_v1  ;;  %v1921_v58 = vsel %vm153_vm8, 1.0, %v2790_v1  ;;  %2032 = vmatprep.subr.bf16.mxu0 %v2970_v8  ;;  %2064 = vmatprep.subr.bf16.mxu1 %v2975_v13 }
  0xb7   :  { %1925 = vmatmul.mubr.msk.f32.gmra.mrb[6].mxu0 %vm174_vm0, %v1917_v24  ;;  %1933 = vmatmul.mubr.msk.f32.gmra.mrb[6].mxu1 %vm174_vm0, %v1917_v24  ;;  %v87_v24 = vld [vmem:[#allocation2 + $0x138] sm:$0xff] }
  0xb8   :  { %287 = vmatprep.mubr.f32.mxu0 %v2790_v1  ;;  %400 = vmatprep.mubr.f32.mxu1 %v2790_v1 }
  0xb9   :  { %2034 = vmatpush1.bf16.msra.mxu0 %v2973_v12  ;;  %2066 = vmatpush1.bf16.msra.mxu1 %v2978_v17 }
  0xba   :  { %2036 = vmatprep.subr.bf16.mxu0 %v2983_v21 }
  0xbb   :  { %1926 = vmatmul.mubr.msk.f32.gmra.mrb[8].mxu0 %vm174_vm0, %v1918_v26  ;;  %1934 = vmatmul.mubr.msk.f32.gmra.mrb[8].mxu1 %vm174_vm0, %v1918_v26  ;;  %v2987_v26 = vpack.c.bf16 %v87_v24, %v83_v20 }
  0xbc   :  { %293 = vmatprep.mubr.f32.mxu0 %v2790_v1  ;;  %406 = vmatprep.mubr.f32.mxu1 %v2790_v1 }
  0xbd   :  { %2038 = vmatpush1.bf16.msra.mxu0 %v2985_v25  ;;  %2068 = vmatprep.subr.bf16.mxu1 %v2987_v26 }
  0xbe   :  { %2040 = vmatprep.subr.bf16.mxu0 %v2995_v34 }
  0xbf   :  { %1927 = vmatmul.mubr.msk.f32.gmra.mrb[10].mxu0 %vm174_vm0, %v1919_v28  ;;  %1935 = vmatmul.mubr.msk.f32.gmra.mrb[10].mxu1 %vm174_vm0, %v1919_v28  ;;  %v86_v28 = vld [vmem:[#allocation2 + $0x130] sm:$0xff] }
  0xc0   :  { %299 = vmatprep.mubr.f32.mxu0 %v2790_v1  ;;  %412 = vmatprep.mubr.f32.mxu1 %v2790_v1 }
  0xc1   :  { %2042 = vmatpush1.bf16.msra.mxu0 %v2997_v40 }
  0xc2   :  { %2044 = vmatprep.subr.bf16.mxu0 %v3006_v53 }
  0xc3   :  { %1928 = vmatmul.mubr.msk.f32.gmra.mrb[12].mxu0 %vm174_vm0, %v1920_v29  ;;  %1936 = vmatmul.mubr.msk.f32.gmra.mrb[12].mxu1 %vm174_vm0, %v1920_v29  ;;  %v2990_v29 = vpack.c.bf16 %v86_v28, %v82_v27 }
  0xc4   :  { %305 = vmatprep.mubr.f32.mxu0 %v2790_v1  ;;  %418 = vmatprep.mubr.f32.mxu1 %v2790_v1 }
  0xc5   :  { %2070 = vmatpush1.bf16.msra.mxu1 %v2990_v29  ;;  %2046 = vmatpush1.bf16.msra.mxu0 %v3008_v55 }
  0xc6   :  { %2072 = vmatprep.subr.bf16.mxu1 %v2999_v42  ;;  %2048 = vmatprep.subr.bf16.mxu0 %v3016_v5 }
  0xc7   :  { %1929 = vmatmul.mubr.msk.f32.gmra.mrb[14].mxu0 %vm174_vm0, %v1921_v58  ;;  %1937 = vmatmul.mubr.msk.f32.gmra.mrb[14].mxu1 %vm174_vm0, %v1921_v58  ;;  %v98_v58 = vld [vmem:[#allocation2 + $0x190] sm:$0xff] }
  0xc8   :  { %518 = vmatprep.mubr.f32.mxu0 %v2790_v1  ;;  %589 = vmatprep.mubr.f32.mxu1 %v2790_v1  ;;  %v3014_v3 = vpack.c.bf16 %v102_v61, %v98_v58 }
  0xc9   :  { %2074 = vmatpush1.bf16.msra.mxu1 %v3002_v47  ;;  %2050 = vmatpush1.bf16.msra.mxu0 %v3020_v16 }
  0xca   :  { %2076 = vmatprep.subr.bf16.mxu1 %v3011_v60  ;;  %2084 = vmatprep.subr.bf16.mxu0 %v2929_v33 }
  0xcd   :  { %2078 = vmatpush1.bf16.msra.mxu1 %v3014_v3 }
  0xce   :  { %2080 = vmatprep.subr.bf16.mxu1 %v3022_v18 }
  0xd1   :  { %2082 = vmatpush1.bf16.msra.mxu1 %v3026_v19 }
  0xd2   :  { %2116 = vmatprep.subr.bf16.mxu1 %v2933_v38 }
 0x17e   :  { %v265_v20 = vpop.f32.mrb[0].mxu0  ;;  %v378_v22 = vpop.f32.mrb[0].mxu1 }
 0x17f   :  { %v1939_v23 = vmul.f32 -1.442695, %v265_v20  ;;  %v267_v24 = vpop.f32.mrb[1].mxu0  ;;  %v380_v27 = vpop.f32.mrb[1].mxu1  ;;  %v1941_v30 = vmul.f32 -1.442695, %v378_v22 }
 0x180   :  { %v1940_v28 = vmul.f32 -1.442695, %v267_v24 }
 0x181   :  { %2591 = vpow2.f32 %v1939_v23 }
 0x182   :  { %2593 = vpow2.f32 %v1940_v28 }
 0x183   :  { %2595 = vtanh.f32 %v380_v27 }
 0x184   :  { %2597 = vpow2.f32 %v1941_v30 }
 0x18b   :  { %v2592_v31 = vpop.eup %2591 }
 0x18c   :  { %v437_v32 = vadd.f32 1.0, %v2592_v31  ;;  %v2594_v35 = vpop.eup %2593 }
 0x18d   :  { %v438_v36 = vadd.f32 1.0, %v2594_v35  ;;  %v2596_v39 = vpop.eup %2595 }
 0x18e   :  { %2599 = vrcp.f32 %v437_v32  ;;  %v2598_v43 = vpop.eup %2597 }
 0x18f   :  { %2601 = vrcp.f32 %v438_v36  ;;  %v439_v51 = vadd.f32 1.0, %v2598_v43 }
 0x191   :  { %2603 = vrcp.f32 %v439_v51 }
 0x198   :  { %v2600_v44 = vpop.eup %2599 }
 0x199   :  { %v448_v46 = vmul.f32 %v2600_v44, %v2596_v39  ;;  %v2602_v48 = vpop.eup %2601 }
 0x19a   :  { %v447_v52 = vmul.f32 0.0, %v2602_v48  ;;  %v3071_v15 = vpop.f32.mrb[14].mxu0  ;;  %v3073_v7 = vpop.f32.mrb[14].mxu1 }
 0x19b   :  { %v2604_v61 = vpop.eup %2603  ;;  %v3075_v9 = vpop.f32.mrb[15].mxu0 }
 0x19c   :  { %v449_v57 = vadd.f32 %v448_v46, %v447_v52  ;;  %v3077_v10 = vpop.f32.mrb[15].mxu1 }
 0x19e   :  { %2605 = vtanh.f32 %v449_v57  ;;  %v3035_v58 = vmul.f32 %v1938_v56, %v449_v57 }
 0x1a8   :  { %v2606_v62 = vpop.eup %2605 }
 0x1a9   :  { %v451_v2 = vmul.f32 %v2606_v62, %v2604_v61 }
 0x1ab   :  { %v452_v6 = vmul.f32 %v1938_v56, %v451_v2 }
 0x1ad   :  { %519 = vmatmul.mubr.f32.vlgmr.msra.gmra.mrb[2].mxu0 %v452_v6  ;;  %590 = vmatmul.mubr.f32.vlgmr.msra.gmra.mrb[2].mxu1 %v452_v6 }
 0x1ae   :  { %2086 = vmatpush1.bf16.msra.mxu0 %v2931_v37  ;;  %2118 = vmatpush1.bf16.msra.mxu1 %v2936_v41 }
 0x1af   :  { %2088 = vmatprep.subr.bf16.mxu0 %v2941_v45  ;;  %2120 = vmatprep.subr.bf16.mxu1 %v2945_v50 }
 0x1b0   :  { %688 = vmatprep.mubr.f32.mxu0 %v2790_v1  ;;  %759 = vmatprep.mubr.f32.mxu1 %v2790_v1 }
 0x1b2   :  { %2090 = vmatpush1.bf16.msra.mxu0 %v2943_v49  ;;  %2122 = vmatpush1.bf16.msra.mxu1 %v2948_v54 }
 0x1b3   :  { %2092 = vmatprep.subr.bf16.mxu0 %v2955_v59  ;;  %2124 = vmatprep.subr.bf16.mxu1 %v2961_v0 }
 0x1b6   :  { %2094 = vmatpush1.bf16.msra.mxu0 %v2959_v63  ;;  %2126 = vmatpush1.bf16.msra.mxu1 %v2964_v4 }
 0x1b7   :  { %2096 = vmatprep.subr.bf16.mxu0 %v2970_v8  ;;  %2128 = vmatprep.subr.bf16.mxu1 %v2975_v13 }
 0x1ba   :  { %2098 = vmatpush1.bf16.msra.mxu0 %v2973_v12  ;;  %2130 = vmatpush1.bf16.msra.mxu1 %v2978_v17 }
 0x1bb   :  { %2100 = vmatprep.subr.bf16.mxu0 %v2983_v21  ;;  %2132 = vmatprep.subr.bf16.mxu1 %v2987_v26 }
 0x1be   :  { %2102 = vmatpush1.bf16.msra.mxu0 %v2985_v25  ;;  %2134 = vmatpush1.bf16.msra.mxu1 %v2990_v29 }
 0x1bf   :  { %2104 = vmatprep.subr.bf16.mxu0 %v2995_v34  ;;  %2136 = vmatprep.subr.bf16.mxu1 %v2999_v42 }
 0x1c2   :  { %2106 = vmatpush1.bf16.msra.mxu0 %v2997_v40  ;;  %2138 = vmatpush1.bf16.msra.mxu1 %v3002_v47 }
 0x1c3   :  { %2108 = vmatprep.subr.bf16.mxu0 %v3006_v53  ;;  %2140 = vmatprep.subr.bf16.mxu1 %v3011_v60 }
 0x1c6   :  { %2110 = vmatpush1.bf16.msra.mxu0 %v3008_v55  ;;  %2142 = vmatpush1.bf16.msra.mxu1 %v3014_v3 }
 0x1c7   :  { %2112 = vmatprep.subr.bf16.mxu0 %v3016_v5  ;;  %2144 = vmatprep.subr.bf16.mxu1 %v3022_v18 }
 0x1ca   :  { %2114 = vmatpush1.bf16.msra.mxu0 %v3020_v16  ;;  %2146 = vmatpush1.bf16.msra.mxu1 %v3026_v19 }
 0x1cb   :  { %2148 = vmatprep.subr.bf16.mxu0 %v2929_v33  ;;  %2180 = vmatprep.subr.bf16.mxu1 %v2933_v38 }
 0x280   :  { %v520_v11 = vpop.f32.mrb[2].mxu0  ;;  %v591_v14 = vpop.f32.mrb[2].mxu1 }
 0x281   :  { %v1942_v20 = vmul.f32 -1.442695, %v520_v11  ;;  %v522_v22 = vpop.f32.mrb[3].mxu0  ;;  %v593_v23 = vpop.f32.mrb[3].mxu1  ;;  %v1944_v27 = vmul.f32 -1.442695, %v591_v14 }
 0x282   :  { %v1943_v24 = vmul.f32 -1.442695, %v522_v22 }
 0x283   :  { %2607 = vpow2.f32 %v1942_v20 }
 0x284   :  { %2609 = vpow2.f32 %v1943_v24 }
 0x285   :  { %2611 = vtanh.f32 %v593_v23 }
 0x286   :  { %2613 = vpow2.f32 %v1944_v27 }
 0x28d   :  { %v2608_v28 = vpop.eup %2607 }
 0x28e   :  { %v609_v30 = vadd.f32 1.0, %v2608_v28  ;;  %v2610_v31 = vpop.eup %2609 }
 0x28f   :  { %v610_v32 = vadd.f32 1.0, %v2610_v31  ;;  %v2612_v35 = vpop.eup %2611 }
 0x290   :  { %2615 = vrcp.f32 %v609_v30  ;;  %v2614_v36 = vpop.eup %2613 }
 0x291   :  { %2617 = vrcp.f32 %v610_v32  ;;  %v611_v46 = vadd.f32 1.0, %v2614_v36 }
 0x293   :  { %2619 = vrcp.f32 %v611_v46 }
 0x29a   :  { %v2616_v39 = vpop.eup %2615 }
 0x29b   :  { %v620_v43 = vmul.f32 %v2616_v39, %v2612_v35  ;;  %v2618_v44 = vpop.eup %2617 }
 0x29c   :  { %v619_v48 = vmul.f32 %v2618_v44, %v3035_v58 }
 0x29d   :  { %v2620_v52 = vpop.eup %2619 }
 0x29e   :  { %v3080_v51 = vadd.f32 %v620_v43, %v619_v48 }
 0x2a0   :  { %2621 = vtanh.f32 %v3080_v51 }
 0x2aa   :  { %v2622_v56 = vpop.eup %2621 }
 0x2ab   :  { %v623_v57 = vmul.f32 %v2622_v56, %v2620_v52 }
 0x2ad   :  { %689 = vmatmul.mubr.f32.vlgmr.msra.gmra.mrb[4].mxu0 %v623_v57  ;;  %760 = vmatmul.mubr.f32.vlgmr.msra.gmra.mrb[4].mxu1 %v623_v57 }
 0x2ae   :  { %2150 = vmatpush1.bf16.msra.mxu0 %v2931_v37  ;;  %2182 = vmatpush1.bf16.msra.mxu1 %v2936_v41 }
 0x2af   :  { %2152 = vmatprep.subr.bf16.mxu0 %v2941_v45  ;;  %2184 = vmatprep.subr.bf16.mxu1 %v2945_v50 }
 0x2b0   :  { %858 = vmatprep.mubr.f32.mxu0 %v2790_v1  ;;  %929 = vmatprep.mubr.f32.mxu1 %v2790_v1 }
 0x2b2   :  { %2154 = vmatpush1.bf16.msra.mxu0 %v2943_v49  ;;  %2186 = vmatpush1.bf16.msra.mxu1 %v2948_v54 }
 0x2b3   :  { %2156 = vmatprep.subr.bf16.mxu0 %v2955_v59  ;;  %2188 = vmatprep.subr.bf16.mxu1 %v2961_v0 }
 0x2b6   :  { %2158 = vmatpush1.bf16.msra.mxu0 %v2959_v63  ;;  %2190 = vmatpush1.bf16.msra.mxu1 %v2964_v4 }
 0x2b7   :  { %2160 = vmatprep.subr.bf16.mxu0 %v2970_v8  ;;  %2192 = vmatprep.subr.bf16.mxu1 %v2975_v13 }
 0x2ba   :  { %2162 = vmatpush1.bf16.msra.mxu0 %v2973_v12  ;;  %2194 = vmatpush1.bf16.msra.mxu1 %v2978_v17 }
 0x2bb   :  { %2164 = vmatprep.subr.bf16.mxu0 %v2983_v21  ;;  %2196 = vmatprep.subr.bf16.mxu1 %v2987_v26 }
 0x2be   :  { %2166 = vmatpush1.bf16.msra.mxu0 %v2985_v25  ;;  %2198 = vmatpush1.bf16.msra.mxu1 %v2990_v29 }
 0x2bf   :  { %2168 = vmatprep.subr.bf16.mxu0 %v2995_v34  ;;  %2200 = vmatprep.subr.bf16.mxu1 %v2999_v42 }
 0x2c2   :  { %2170 = vmatpush1.bf16.msra.mxu0 %v2997_v40  ;;  %2202 = vmatpush1.bf16.msra.mxu1 %v3002_v47 }
 0x2c3   :  { %2172 = vmatprep.subr.bf16.mxu0 %v3006_v53  ;;  %2204 = vmatprep.subr.bf16.mxu1 %v3011_v60 }
 0x2c6   :  { %2174 = vmatpush1.bf16.msra.mxu0 %v3008_v55  ;;  %2206 = vmatpush1.bf16.msra.mxu1 %v3014_v3 }
 0x2c7   :  { %2176 = vmatprep.subr.bf16.mxu0 %v3016_v5  ;;  %2208 = vmatprep.subr.bf16.mxu1 %v3022_v18 }
 0x2ca   :  { %2178 = vmatpush1.bf16.msra.mxu0 %v3020_v16  ;;  %2210 = vmatpush1.bf16.msra.mxu1 %v3026_v19 }
 0x2cb   :  { %2212 = vmatprep.subr.bf16.mxu0 %v2929_v33  ;;  %2244 = vmatprep.subr.bf16.mxu1 %v2933_v38 }
 0x380   :  { %v690_v58 = vpop.f32.mrb[4].mxu0  ;;  %v761_v61 = vpop.f32.mrb[4].mxu1 }
 0x381   :  { %v1945_v62 = vmul.f32 -1.442695, %v690_v58  ;;  %v692_v2 = vpop.f32.mrb[5].mxu0  ;;  %v763_v6 = vpop.f32.mrb[5].mxu1  ;;  %v1947_v14 = vmul.f32 -1.442695, %v761_v61 }
 0x382   :  { %v1946_v11 = vmul.f32 -1.442695, %v692_v2 }
 0x383   :  { %2623 = vpow2.f32 %v1945_v62 }
 0x384   :  { %2625 = vpow2.f32 %v1946_v11 }
 0x385   :  { %2627 = vtanh.f32 %v763_v6 }
 0x386   :  { %2629 = vpow2.f32 %v1947_v14 }
 0x38d   :  { %v2624_v20 = vpop.eup %2623 }
 0x38e   :  { %v779_v22 = vadd.f32 1.0, %v2624_v20  ;;  %v2626_v23 = vpop.eup %2625 }
 0x38f   :  { %v780_v24 = vadd.f32 1.0, %v2626_v23  ;;  %v2628_v27 = vpop.eup %2627 }
 0x390   :  { %2631 = vrcp.f32 %v779_v22  ;;  %v2630_v28 = vpop.eup %2629 }
 0x391   :  { %2633 = vrcp.f32 %v780_v24  ;;  %v781_v35 = vadd.f32 1.0, %v2630_v28 }
 0x393   :  { %2635 = vrcp.f32 %v781_v35 }
 0x39a   :  { %v2632_v30 = vpop.eup %2631 }
 0x39b   :  { %v790_v31 = vmul.f32 %v2632_v30, %v2628_v27  ;;  %v2634_v32 = vpop.eup %2633 }
 0x39c   :  { %v789_v36 = vmul.f32 %v2634_v32, %v3080_v51 }
 0x39d   :  { %v2636_v43 = vpop.eup %2635 }
 0x39e   :  { %v3118_v39 = vadd.f32 %v790_v31, %v789_v36 }
 0x3a0   :  { %2637 = vtanh.f32 %v3118_v39 }
 0x3aa   :  { %v2638_v44 = vpop.eup %2637 }
 0x3ab   :  { %v793_v46 = vmul.f32 %v2638_v44, %v2636_v43 }
 0x3ad   :  { %859 = vmatmul.mubr.f32.vlgmr.msra.gmra.mrb[6].mxu0 %v793_v46  ;;  %930 = vmatmul.mubr.f32.vlgmr.msra.gmra.mrb[6].mxu1 %v793_v46 }
 0x3ae   :  { %2214 = vmatpush1.bf16.msra.mxu0 %v2931_v37  ;;  %2246 = vmatpush1.bf16.msra.mxu1 %v2936_v41 }
 0x3af   :  { %2216 = vmatprep.subr.bf16.mxu0 %v2941_v45  ;;  %2248 = vmatprep.subr.bf16.mxu1 %v2945_v50 }
 0x3b0   :  { %1028 = vmatprep.mubr.f32.mxu0 %v2790_v1  ;;  %1099 = vmatprep.mubr.f32.mxu1 %v2790_v1 }
 0x3b2   :  { %2218 = vmatpush1.bf16.msra.mxu0 %v2943_v49  ;;  %2250 = vmatpush1.bf16.msra.mxu1 %v2948_v54 }
 0x3b3   :  { %2220 = vmatprep.subr.bf16.mxu0 %v2955_v59  ;;  %2252 = vmatprep.subr.bf16.mxu1 %v2961_v0 }
 0x3b6   :  { %2222 = vmatpush1.bf16.msra.mxu0 %v2959_v63  ;;  %2254 = vmatpush1.bf16.msra.mxu1 %v2964_v4 }
 0x3b7   :  { %2224 = vmatprep.subr.bf16.mxu0 %v2970_v8  ;;  %2256 = vmatprep.subr.bf16.mxu1 %v2975_v13 }
 0x3ba   :  { %2226 = vmatpush1.bf16.msra.mxu0 %v2973_v12  ;;  %2258 = vmatpush1.bf16.msra.mxu1 %v2978_v17 }
 0x3bb   :  { %2228 = vmatprep.subr.bf16.mxu0 %v2983_v21  ;;  %2260 = vmatprep.subr.bf16.mxu1 %v2987_v26 }
 0x3be   :  { %2230 = vmatpush1.bf16.msra.mxu0 %v2985_v25  ;;  %2262 = vmatpush1.bf16.msra.mxu1 %v2990_v29 }
 0x3bf   :  { %2232 = vmatprep.subr.bf16.mxu0 %v2995_v34  ;;  %2264 = vmatprep.subr.bf16.mxu1 %v2999_v42 }
 0x3c2   :  { %2234 = vmatpush1.bf16.msra.mxu0 %v2997_v40  ;;  %2266 = vmatpush1.bf16.msra.mxu1 %v3002_v47 }
 0x3c3   :  { %2236 = vmatprep.subr.bf16.mxu0 %v3006_v53  ;;  %2268 = vmatprep.subr.bf16.mxu1 %v3011_v60 }
 0x3c6   :  { %2238 = vmatpush1.bf16.msra.mxu0 %v3008_v55  ;;  %2270 = vmatpush1.bf16.msra.mxu1 %v3014_v3 }
 0x3c7   :  { %2240 = vmatprep.subr.bf16.mxu0 %v3016_v5  ;;  %2272 = vmatprep.subr.bf16.mxu1 %v3022_v18 }
 0x3ca   :  { %2242 = vmatpush1.bf16.msra.mxu0 %v3020_v16  ;;  %2274 = vmatpush1.bf16.msra.mxu1 %v3026_v19 }
 0x3cb   :  { %2276 = vmatprep.subr.bf16.mxu0 %v2929_v33  ;;  %2308 = vmatprep.subr.bf16.mxu1 %v2933_v38 }
 0x480   :  { %v860_v48 = vpop.f32.mrb[6].mxu0  ;;  %v931_v51 = vpop.f32.mrb[6].mxu1 }
 0x481   :  { %v1948_v52 = vmul.f32 -1.442695, %v860_v48  ;;  %v862_v56 = vpop.f32.mrb[7].mxu0  ;;  %v933_v57 = vpop.f32.mrb[7].mxu1  ;;  %v1950_v61 = vmul.f32 -1.442695, %v931_v51 }
 0x482   :  { %v1949_v58 = vmul.f32 -1.442695, %v862_v56 }
 0x483   :  { %2639 = vpow2.f32 %v1948_v52 }
 0x484   :  { %2641 = vpow2.f32 %v1949_v58 }
 0x485   :  { %2643 = vtanh.f32 %v933_v57 }
 0x486   :  { %2645 = vpow2.f32 %v1950_v61 }
 0x48d   :  { %v2640_v62 = vpop.eup %2639 }
 0x48e   :  { %v949_v2 = vadd.f32 1.0, %v2640_v62  ;;  %v2642_v6 = vpop.eup %2641 }
 0x48f   :  { %v950_v11 = vadd.f32 1.0, %v2642_v6  ;;  %v2644_v14 = vpop.eup %2643 }
 0x490   :  { %2647 = vrcp.f32 %v949_v2  ;;  %v2646_v20 = vpop.eup %2645 }
 0x491   :  { %2649 = vrcp.f32 %v950_v11  ;;  %v951_v27 = vadd.f32 1.0, %v2646_v20 }
 0x493   :  { %2651 = vrcp.f32 %v951_v27 }
 0x49a   :  { %v2648_v22 = vpop.eup %2647 }
 0x49b   :  { %v960_v23 = vmul.f32 %v2648_v22, %v2644_v14  ;;  %v2650_v24 = vpop.eup %2649 }
 0x49c   :  { %v959_v28 = vmul.f32 %v2650_v24, %v3118_v39 }
 0x49d   :  { %v2652_v31 = vpop.eup %2651 }
 0x49e   :  { %v3156_v30 = vadd.f32 %v960_v23, %v959_v28 }
 0x4a0   :  { %2653 = vtanh.f32 %v3156_v30 }
 0x4aa   :  { %v2654_v32 = vpop.eup %2653 }
 0x4ab   :  { %v963_v35 = vmul.f32 %v2654_v32, %v2652_v31 }
 0x4ad   :  { %1029 = vmatmul.mubr.f32.vlgmr.msra.gmra.mrb[8].mxu0 %v963_v35  ;;  %1100 = vmatmul.mubr.f32.vlgmr.msra.gmra.mrb[8].mxu1 %v963_v35 }
 0x4ae   :  { %2278 = vmatpush1.bf16.msra.mxu0 %v2931_v37  ;;  %2310 = vmatpush1.bf16.msra.mxu1 %v2936_v41 }
 0x4af   :  { %2280 = vmatprep.subr.bf16.mxu0 %v2941_v45  ;;  %2312 = vmatprep.subr.bf16.mxu1 %v2945_v50 }
 0x4b0   :  { %1198 = vmatprep.mubr.f32.mxu0 %v2790_v1  ;;  %1269 = vmatprep.mubr.f32.mxu1 %v2790_v1 }
 0x4b2   :  { %2282 = vmatpush1.bf16.msra.mxu0 %v2943_v49  ;;  %2314 = vmatpush1.bf16.msra.mxu1 %v2948_v54 }
 0x4b3   :  { %2284 = vmatprep.subr.bf16.mxu0 %v2955_v59  ;;  %2316 = vmatprep.subr.bf16.mxu1 %v2961_v0 }
 0x4b6   :  { %2286 = vmatpush1.bf16.msra.mxu0 %v2959_v63  ;;  %2318 = vmatpush1.bf16.msra.mxu1 %v2964_v4 }
 0x4b7   :  { %2288 = vmatprep.subr.bf16.mxu0 %v2970_v8  ;;  %2320 = vmatprep.subr.bf16.mxu1 %v2975_v13 }
 0x4ba   :  { %2290 = vmatpush1.bf16.msra.mxu0 %v2973_v12  ;;  %2322 = vmatpush1.bf16.msra.mxu1 %v2978_v17 }
 0x4bb   :  { %2292 = vmatprep.subr.bf16.mxu0 %v2983_v21  ;;  %2324 = vmatprep.subr.bf16.mxu1 %v2987_v26 }
 0x4be   :  { %2294 = vmatpush1.bf16.msra.mxu0 %v2985_v25  ;;  %2326 = vmatpush1.bf16.msra.mxu1 %v2990_v29 }
 0x4bf   :  { %2296 = vmatprep.subr.bf16.mxu0 %v2995_v34  ;;  %2328 = vmatprep.subr.bf16.mxu1 %v2999_v42 }
 0x4c2   :  { %2298 = vmatpush1.bf16.msra.mxu0 %v2997_v40  ;;  %2330 = vmatpush1.bf16.msra.mxu1 %v3002_v47 }
 0x4c3   :  { %2300 = vmatprep.subr.bf16.mxu0 %v3006_v53  ;;  %2332 = vmatprep.subr.bf16.mxu1 %v3011_v60 }
 0x4c6   :  { %2302 = vmatpush1.bf16.msra.mxu0 %v3008_v55  ;;  %2334 = vmatpush1.bf16.msra.mxu1 %v3014_v3 }
 0x4c7   :  { %2304 = vmatprep.subr.bf16.mxu0 %v3016_v5  ;;  %2336 = vmatprep.subr.bf16.mxu1 %v3022_v18 }
 0x4ca   :  { %2306 = vmatpush1.bf16.msra.mxu0 %v3020_v16  ;;  %2338 = vmatpush1.bf16.msra.mxu1 %v3026_v19 }
 0x4cb   :  { %2340 = vmatprep.subr.bf16.mxu0 %v2929_v33  ;;  %2372 = vmatprep.subr.bf16.mxu1 %v2933_v38 }
 0x580   :  { %v1030_v36 = vpop.f32.mrb[8].mxu0  ;;  %v1101_v39 = vpop.f32.mrb[8].mxu1 }
 0x581   :  { %v1951_v43 = vmul.f32 -1.442695, %v1030_v36  ;;  %v1032_v44 = vpop.f32.mrb[9].mxu0  ;;  %v1103_v46 = vpop.f32.mrb[9].mxu1  ;;  %v1953_v51 = vmul.f32 -1.442695, %v1101_v39 }
 0x582   :  { %v1952_v48 = vmul.f32 -1.442695, %v1032_v44 }
 0x583   :  { %2655 = vpow2.f32 %v1951_v43 }
 0x584   :  { %2657 = vpow2.f32 %v1952_v48 }
 0x585   :  { %2659 = vtanh.f32 %v1103_v46 }
 0x586   :  { %2661 = vpow2.f32 %v1953_v51 }
 0x58d   :  { %v2656_v52 = vpop.eup %2655 }
 0x58e   :  { %v1119_v56 = vadd.f32 1.0, %v2656_v52  ;;  %v2658_v57 = vpop.eup %2657 }
 0x58f   :  { %v1120_v58 = vadd.f32 1.0, %v2658_v57  ;;  %v2660_v61 = vpop.eup %2659 }
 0x590   :  { %2663 = vrcp.f32 %v1119_v56  ;;  %v2662_v62 = vpop.eup %2661 }
 0x591   :  { %2665 = vrcp.f32 %v1120_v58  ;;  %v1121_v14 = vadd.f32 1.0, %v2662_v62 }
 0x593   :  { %2667 = vrcp.f32 %v1121_v14 }
 0x59a   :  { %v2664_v2 = vpop.eup %2663 }
 0x59b   :  { %v1130_v6 = vmul.f32 %v2664_v2, %v2660_v61  ;;  %v2666_v11 = vpop.eup %2665 }
 0x59c   :  { %v1129_v20 = vmul.f32 %v2666_v11, %v3156_v30 }
 0x59d   :  { %v2668_v23 = vpop.eup %2667 }
 0x59e   :  { %v3194_v22 = vadd.f32 %v1130_v6, %v1129_v20 }
 0x5a0   :  { %2669 = vtanh.f32 %v3194_v22 }
 0x5aa   :  { %v2670_v24 = vpop.eup %2669 }
 0x5ab   :  { %v1133_v27 = vmul.f32 %v2670_v24, %v2668_v23 }
 0x5ad   :  { %1199 = vmatmul.mubr.f32.vlgmr.msra.gmra.mrb[10].mxu0 %v1133_v27  ;;  %1270 = vmatmul.mubr.f32.vlgmr.msra.gmra.mrb[10].mxu1 %v1133_v27 }
 0x5ae   :  { %2342 = vmatpush1.bf16.msra.mxu0 %v2931_v37  ;;  %2374 = vmatpush1.bf16.msra.mxu1 %v2936_v41 }
 0x5af   :  { %2344 = vmatprep.subr.bf16.mxu0 %v2941_v45  ;;  %2376 = vmatprep.subr.bf16.mxu1 %v2945_v50 }
 0x5b0   :  { %1368 = vmatprep.mubr.f32.mxu0 %v2790_v1  ;;  %1439 = vmatprep.mubr.f32.mxu1 %v2790_v1 }
 0x5b2   :  { %2346 = vmatpush1.bf16.msra.mxu0 %v2943_v49  ;;  %2378 = vmatpush1.bf16.msra.mxu1 %v2948_v54 }
 0x5b3   :  { %2348 = vmatprep.subr.bf16.mxu0 %v2955_v59  ;;  %2380 = vmatprep.subr.bf16.mxu1 %v2961_v0 }
 0x5b6   :  { %2350 = vmatpush1.bf16.msra.mxu0 %v2959_v63  ;;  %2382 = vmatpush1.bf16.msra.mxu1 %v2964_v4 }
 0x5b7   :  { %2352 = vmatprep.subr.bf16.mxu0 %v2970_v8  ;;  %2384 = vmatprep.subr.bf16.mxu1 %v2975_v13 }
 0x5ba   :  { %2354 = vmatpush1.bf16.msra.mxu0 %v2973_v12  ;;  %2386 = vmatpush1.bf16.msra.mxu1 %v2978_v17 }
 0x5bb   :  { %2356 = vmatprep.subr.bf16.mxu0 %v2983_v21  ;;  %2388 = vmatprep.subr.bf16.mxu1 %v2987_v26 }
 0x5be   :  { %2358 = vmatpush1.bf16.msra.mxu0 %v2985_v25  ;;  %2390 = vmatpush1.bf16.msra.mxu1 %v2990_v29 }
 0x5bf   :  { %2360 = vmatprep.subr.bf16.mxu0 %v2995_v34  ;;  %2392 = vmatprep.subr.bf16.mxu1 %v2999_v42 }
 0x5c2   :  { %2362 = vmatpush1.bf16.msra.mxu0 %v2997_v40  ;;  %2394 = vmatpush1.bf16.msra.mxu1 %v3002_v47 }
 0x5c3   :  { %2364 = vmatprep.subr.bf16.mxu0 %v3006_v53  ;;  %2396 = vmatprep.subr.bf16.mxu1 %v3011_v60 }
 0x5c6   :  { %2366 = vmatpush1.bf16.msra.mxu0 %v3008_v55  ;;  %2398 = vmatpush1.bf16.msra.mxu1 %v3014_v3 }
 0x5c7   :  { %2368 = vmatprep.subr.bf16.mxu0 %v3016_v5  ;;  %2400 = vmatprep.subr.bf16.mxu1 %v3022_v18 }
 0x5ca   :  { %2370 = vmatpush1.bf16.msra.mxu0 %v3020_v16  ;;  %2402 = vmatpush1.bf16.msra.mxu1 %v3026_v19 }
 0x5cb   :  { %2404 = vmatprep.subr.bf16.mxu0 %v2929_v33  ;;  %2436 = vmatprep.subr.bf16.mxu1 %v2933_v38 }
 0x680   :  { %v1200_v28 = vpop.f32.mrb[10].mxu0  ;;  %v1271_v30 = vpop.f32.mrb[10].mxu1 }
 0x681   :  { %v1954_v31 = vmul.f32 -1.442695, %v1200_v28  ;;  %v1202_v32 = vpop.f32.mrb[11].mxu0  ;;  %v1273_v35 = vpop.f32.mrb[11].mxu1  ;;  %v1956_v39 = vmul.f32 -1.442695, %v1271_v30 }
 0x682   :  { %v1955_v36 = vmul.f32 -1.442695, %v1202_v32 }
 0x683   :  { %2671 = vpow2.f32 %v1954_v31 }
 0x684   :  { %2673 = vpow2.f32 %v1955_v36 }
 0x685   :  { %2675 = vtanh.f32 %v1273_v35 }
 0x686   :  { %2677 = vpow2.f32 %v1956_v39 }
 0x68d   :  { %v2672_v43 = vpop.eup %2671 }
 0x68e   :  { %v1289_v44 = vadd.f32 1.0, %v2672_v43  ;;  %v2674_v46 = vpop.eup %2673 }
 0x68f   :  { %v1290_v48 = vadd.f32 1.0, %v2674_v46  ;;  %v2676_v51 = vpop.eup %2675 }
 0x690   :  { %2679 = vrcp.f32 %v1289_v44  ;;  %v2678_v52 = vpop.eup %2677 }
 0x691   :  { %2681 = vrcp.f32 %v1290_v48  ;;  %v1291_v61 = vadd.f32 1.0, %v2678_v52 }
 0x693   :  { %2683 = vrcp.f32 %v1291_v61  ;;  %v1817_v61 = vld [vmem:[#allocation4 + $0x18] sm:$0xff] }
 0x69a   :  { %v2680_v56 = vpop.eup %2679 }
 0x69b   :  { %v1300_v57 = vmul.f32 %v2680_v56, %v2676_v51  ;;  %v2682_v58 = vpop.eup %2681 }
 0x69c   :  { %v1299_v62 = vmul.f32 %v2682_v58, %v3194_v22  ;;  %v1816_v58 = vld [vmem:[#allocation4 + $0x10] sm:$0xff] }
 0x69d   :  { %v2684_v6 = vpop.eup %2683 }
 0x69e   :  { %v3232_v2 = vadd.f32 %v1300_v57, %v1299_v62  ;;  %v2535_v62 = vpack.c.bf16 %v1817_v61, %v1816_v58 }
 0x6a0   :  { %2685 = vtanh.f32 %v3232_v2 }
 0x6aa   :  { %v2686_v11 = vpop.eup %2685 }
 0x6ab   :  { %v1303_v14 = vmul.f32 %v2686_v11, %v2684_v6  ;;  %v1819_v6 = vld [vmem:[#allocation4 + $0x28] sm:$0xff] }
 0x6ad   :  { %1369 = vmatmul.mubr.f32.vlgmr.msra.gmra.mrb[12].mxu0 %v1303_v14  ;;  %1440 = vmatmul.mubr.f32.vlgmr.msra.gmra.mrb[12].mxu1 %v1303_v14  ;;  %v1820_v14 = vld [vmem:[#allocation4 + $0x30] sm:$0xff] }
 0x6ae   :  { %2406 = vmatpush1.bf16.msra.mxu0 %v2931_v37  ;;  %2438 = vmatpush1.bf16.msra.mxu1 %v2936_v41 }
 0x6af   :  { %2408 = vmatprep.subr.bf16.mxu0 %v2941_v45  ;;  %2440 = vmatprep.subr.bf16.mxu1 %v2945_v50 }
 0x6b0   :  { %1538 = vmatprep.mubr.f32.mxu0 %v2790_v1  ;;  %1609 = vmatprep.mubr.f32.mxu1 %v2790_v1 }
 0x6b2   :  { %2410 = vmatpush1.bf16.msra.mxu0 %v2943_v49  ;;  %2442 = vmatpush1.bf16.msra.mxu1 %v2948_v54 }
 0x6b3   :  { %2412 = vmatprep.subr.bf16.mxu0 %v2955_v59  ;;  %2444 = vmatprep.subr.bf16.mxu1 %v2961_v0 }
 0x6b6   :  { %2414 = vmatpush1.bf16.msra.mxu0 %v2959_v63  ;;  %2446 = vmatpush1.bf16.msra.mxu1 %v2964_v4 }
 0x6b7   :  { %2416 = vmatprep.subr.bf16.mxu0 %v2970_v8  ;;  %2448 = vmatprep.subr.bf16.mxu1 %v2975_v13 }
 0x6ba   :  { %2418 = vmatpush1.bf16.msra.mxu0 %v2973_v12  ;;  %2450 = vmatpush1.bf16.msra.mxu1 %v2978_v17 }
 0x6bb   :  { %2420 = vmatprep.subr.bf16.mxu0 %v2983_v21  ;;  %2452 = vmatprep.subr.bf16.mxu1 %v2987_v26 }
 0x6be   :  { %2422 = vmatpush1.bf16.msra.mxu0 %v2985_v25  ;;  %2454 = vmatpush1.bf16.msra.mxu1 %v2990_v29 }
 0x6bf   :  { %2424 = vmatprep.subr.bf16.mxu0 %v2995_v34  ;;  %2456 = vmatprep.subr.bf16.mxu1 %v2999_v42 }
 0x6c2   :  { %2426 = vmatpush1.bf16.msra.mxu0 %v2997_v40  ;;  %2458 = vmatpush1.bf16.msra.mxu1 %v3002_v47 }
 0x6c3   :  { %2428 = vmatprep.subr.bf16.mxu0 %v3006_v53  ;;  %2460 = vmatprep.subr.bf16.mxu1 %v3011_v60 }
 0x6c6   :  { %2430 = vmatpush1.bf16.msra.mxu0 %v3008_v55  ;;  %2462 = vmatpush1.bf16.msra.mxu1 %v3014_v3 }
 0x6c7   :  { %2432 = vmatprep.subr.bf16.mxu0 %v3016_v5  ;;  %2464 = vmatprep.subr.bf16.mxu1 %v3022_v18 }
 0x6ca   :  { %2434 = vmatpush1.bf16.msra.mxu0 %v3020_v16  ;;  %2466 = vmatpush1.bf16.msra.mxu1 %v3026_v19 }
 0x6cb   :  { %2468 = vmatprep.subr.bf16.mxu0 %v2929_v33  ;;  %2500 = vmatprep.subr.bf16.mxu1 %v2933_v38 }
 0x780   :  { %v1370_v20 = vpop.f32.mrb[12].mxu0  ;;  %v1441_v22 = vpop.f32.mrb[12].mxu1 }
 0x781   :  { %v1957_v23 = vmul.f32 -1.442695, %v1370_v20  ;;  %v1372_v24 = vpop.f32.mrb[13].mxu0  ;;  %v1443_v27 = vpop.f32.mrb[13].mxu1  ;;  %v1959_v30 = vmul.f32 -1.442695, %v1441_v22 }
 0x782   :  { %v1958_v28 = vmul.f32 -1.442695, %v1372_v24  ;;  %v1821_v20 = vld [vmem:[#allocation4 + $0x38] sm:$0xff]  ;;  %v1823_v24 = vld [vmem:[#allocation4 + $0x48] sm:$0xff] }
 0x783   :  { %2687 = vpow2.f32 %v1957_v23  ;;  %v2541_v22 = vpack.c.bf16 %v1821_v20, %v1820_v14  ;;  %v1822_v23 = vld [vmem:[#allocation4 + $0x40] sm:$0xff] }
 0x784   :  { %2689 = vpow2.f32 %v1958_v28  ;;  %v1824_v28 = vld [vmem:[#allocation4 + $0x50] sm:$0xff] }
 0x785   :  { %2691 = vtanh.f32 %v1443_v27  ;;  %v2544_v27 = vpack.c.bf16 %v1823_v24, %v1822_v23 }
 0x786   :  { %2693 = vpow2.f32 %v1959_v30  ;;  %v1825_v30 = vld [vmem:[#allocation4 + $0x58] sm:$0xff] }
 0x78d   :  { %v2688_v31 = vpop.eup %2687 }
 0x78e   :  { %v1459_v32 = vadd.f32 1.0, %v2688_v31  ;;  %v2690_v35 = vpop.eup %2689  ;;  %v2547_v31 = vpack.c.bf16 %v1825_v30, %v1824_v28 }
 0x78f   :  { %v1460_v36 = vadd.f32 1.0, %v2690_v35  ;;  %v2692_v33 = vpop.eup %2691  ;;  %v1827_v35 = vld [vmem:[#allocation4 + $0x68] sm:$0xff] }
 0x790   :  { %2695 = vrcp.f32 %v1459_v32  ;;  %v2694_v39 = vpop.eup %2693  ;;  %v1826_v32 = vld [vmem:[#allocation4 + $0x60] sm:$0xff] }
 0x791   :  { %2697 = vrcp.f32 %v1460_v36  ;;  %v1461_v46 = vadd.f32 1.0, %v2694_v39  ;;  %v2550_v36 = vpack.c.bf16 %v1827_v35, %v1826_v32  ;;  %v1829_v39 = vld [vmem:[#allocation4 + $0x78] sm:$0xff] }
 0x793   :  { %2699 = vrcp.f32 %v1461_v46 }
 0x79a   :  { %v2696_v38 = vpop.eup %2695 }
 0x79b   :  { %v1470_v43 = vmul.f32 %v2696_v38, %v2692_v33  ;;  %v2698_v44 = vpop.eup %2697  ;;  %v1828_v33 = vld [vmem:[#allocation4 + $0x70] sm:$0xff] }
 0x79c   :  { %v1469_v48 = vmul.f32 %v2698_v44, %v3232_v2  ;;  %v1818_v2 = vld [vmem:[#allocation4 + $0x20] sm:$0xff]  ;;  %v2553_v38 = vpack.c.bf16 %v1829_v39, %v1828_v33 }
 0x79d   :  { %v2700_v52 = vpop.eup %2699  ;;  %v2538_v11 = vpack.c.bf16 %v1819_v6, %v1818_v2 }
 0x79e   :  { %v3270_v51 = vadd.f32 %v1470_v43, %v1469_v48 }
 0x7a0   :  { %2701 = vtanh.f32 %v3270_v51 }
 0x7aa   :  { %v2702_v56 = vpop.eup %2701 }
 0x7ab   :  { %v1473_v57 = vmul.f32 %v2702_v56, %v2700_v52 }
 0x7ad   :  { %1539 = vmatmul.mubr.f32.vlgmr.msra.gmra.mrb[16].mxu0 %v1473_v57  ;;  %1610 = vmatmul.mubr.f32.vlgmr.msra.gmra.mrb[16].mxu1 %v1473_v57 }
 0x7ae   :  { %2470 = vmatpush1.bf16.msra.mxu0 %v2931_v37  ;;  %2502 = vmatpush1.bf16.msra.mxu1 %v2936_v41 }
 0x7af   :  { %2472 = vmatprep.subr.bf16.mxu0 %v2941_v45  ;;  %2504 = vmatprep.subr.bf16.mxu1 %v2945_v50 }
 0x7b0   :  { %1708 = vmatprep.mubr.f32.mxu0 %v2790_v1  ;;  %1779 = vmatprep.mubr.f32.mxu1 %v2790_v1 }
 0x7b2   :  { %2474 = vmatpush1.bf16.msra.mxu0 %v2943_v49  ;;  %2506 = vmatpush1.bf16.msra.mxu1 %v2948_v54 }
 0x7b3   :  { %2476 = vmatprep.subr.bf16.mxu0 %v2955_v59  ;;  %2508 = vmatprep.subr.bf16.mxu1 %v2961_v0 }
 0x7b6   :  { %2478 = vmatpush1.bf16.msra.mxu0 %v2959_v63  ;;  %2510 = vmatpush1.bf16.msra.mxu1 %v2964_v4 }
 0x7b7   :  { %2480 = vmatprep.subr.bf16.mxu0 %v2970_v8  ;;  %2512 = vmatprep.subr.bf16.mxu1 %v2975_v13 }
 0x7ba   :  { %2482 = vmatpush1.bf16.msra.mxu0 %v2973_v12  ;;  %2514 = vmatpush1.bf16.msra.mxu1 %v2978_v17 }
 0x7bb   :  { %2484 = vmatprep.subr.bf16.mxu0 %v2983_v21  ;;  %2516 = vmatprep.subr.bf16.mxu1 %v2987_v26 }
 0x7be   :  { %2486 = vmatpush1.bf16.msra.mxu0 %v2985_v25  ;;  %2518 = vmatpush1.bf16.msra.mxu1 %v2990_v29 }
 0x7bf   :  { %2488 = vmatprep.subr.bf16.mxu0 %v2995_v34  ;;  %2520 = vmatprep.subr.bf16.mxu1 %v2999_v42 }
 0x7c2   :  { %2490 = vmatpush1.bf16.msra.mxu0 %v2997_v40  ;;  %2522 = vmatpush1.bf16.msra.mxu1 %v3002_v47 }
 0x7c3   :  { %2492 = vmatprep.subr.bf16.mxu0 %v3006_v53  ;;  %2524 = vmatprep.subr.bf16.mxu1 %v3011_v60 }
 0x7c6   :  { %2494 = vmatpush1.bf16.msra.mxu0 %v3008_v55  ;;  %2526 = vmatpush1.bf16.msra.mxu1 %v3014_v3 }
 0x7c7   :  { %2496 = vmatprep.subr.bf16.mxu0 %v3016_v5  ;;  %2528 = vmatprep.subr.bf16.mxu1 %v3022_v18  ;;  %v1814_v5 = vld [vmem:[#allocation4] sm:$0xff] }
 0x7ca   :  { %2498 = vmatpush1.bf16.msra.mxu0 %v3020_v16  ;;  %2530 = vmatpush1.bf16.msra.mxu1 %v3026_v19  ;;  %v1815_v16 = vld [vmem:[#allocation4 + $0x8] sm:$0xff]  ;;  %v2791_v19 = vmov 0.0|0.0  }
 0x7cb   :  { %v2532_v18 = vpack.c.bf16 %v1815_v16, %v1814_v5  ;;  %2531 = vmatprep.subr.bf16.mxu0 %v2791_v19 }
 0x880   :  { %v1540_v37 = vpop.f32.mrb[16].mxu0  ;;  %v1611_v41 = vpop.f32.mrb[16].mxu1 }
 0x881   :  { %v1616_v45 = vadd.f32 %v1540_v37, %v3071_v15  ;;  %v1618_v49 = vadd.f32 %v1611_v41, %v3073_v7  ;;  %v1542_v50 = vpop.f32.mrb[17].mxu0  ;;  %v1613_v54 = vpop.f32.mrb[17].mxu1 }
 0x882   :  { %v1617_v59 = vadd.f32 %v1542_v50, %v3075_v9  ;;  %v1619_v63 = vadd.f32 %v1613_v54, %v3077_v10 }
 0x883   :  { %v1960_v0 = vmul.f32 -1.442695, %v1616_v45  ;;  %v1962_v8 = vmul.f32 -1.442695, %v1618_v49 }
 0x884   :  { %v1961_v4 = vmul.f32 -1.442695, %v1617_v59 }
 0x885   :  { %2703 = vpow2.f32 %v1960_v0 }
 0x886   :  { %2705 = vpow2.f32 %v1961_v4 }
 0x887   :  { %2707 = vtanh.f32 %v1619_v63 }
 0x888   :  { %2709 = vpow2.f32 %v1962_v8 }
 0x88f   :  { %v2704_v12 = vpop.eup %2703 }
 0x890   :  { %v1629_v13 = vadd.f32 1.0, %v2704_v12  ;;  %v2706_v17 = vpop.eup %2705 }
 0x891   :  { %v1630_v21 = vadd.f32 1.0, %v2706_v17  ;;  %v2708_v25 = vpop.eup %2707  ;;  %v1966_v17 = vld [vmem:[%s3329_s4] ss:$0 sm:$0xff] }
 0x892   :  { %2711 = vrcp.f32 %v1629_v13  ;;  %v2710_v26 = vpop.eup %2709 }
 0x893   :  { %2713 = vrcp.f32 %v1630_v21  ;;  %v1631_v42 = vadd.f32 1.0, %v2710_v26 }
 0x895   :  { %2715 = vrcp.f32 %v1631_v42 }
 0x89c   :  { %v2712_v29 = vpop.eup %2711 }
 0x89d   :  { %v1640_v34 = vmul.f32 %v2712_v29, %v2708_v25  ;;  %v2714_v40 = vpop.eup %2713 }
 0x89e   :  { %v1639_v47 = vmul.f32 %v2714_v40, %v3270_v51 }
 0x89f   :  { %v2716_v55 = vpop.eup %2715 }
 0x8a0   :  { %v3310_v53 = vadd.f32 %v1640_v34, %v1639_v47 }
 0x8a2   :  { %2717 = vtanh.f32 %v3310_v53 }
 0x8ac   :  { %v2718_v60 = vpop.eup %2717 }
 0x8ad   :  { %v1643_v3 = vmul.f32 %v2718_v60, %v2716_v55 }
 0x8af   :  { %1709 = vmatmul.mubr.f32.vlgmr.msra.gmra.mrb[18].mxu0 %v1643_v3  ;;  %1780 = vmatmul.mubr.f32.vlgmr.msra.gmra.mrb[18].mxu1 %v1643_v3 }
 0x8b0   :  { %2533 = vmatpush3.bf16.msra.mxu0 %v2532_v18  ;;  %2016 = vmatprep.mubr.msk.f32.mxu0 %vm2792_vm10, %v2790_v1 }
 0x8b1   :  { %2534 = vmatprep.subr.bf16.mxu0 %v2791_v19 }
 0x8b4   :  { %2536 = vmatpush3.bf16.msra.mxu0 %v2535_v62 }
 0x8b5   :  { %2537 = vmatprep.subr.bf16.mxu0 %v2791_v19 }
 0x8b8   :  { %2539 = vmatpush3.bf16.msra.mxu0 %v2538_v11 }
 0x8b9   :  { %2540 = vmatprep.subr.bf16.mxu0 %v2791_v19 }
 0x8bc   :  { %2542 = vmatpush3.bf16.msra.mxu0 %v2541_v22 }
 0x8bd   :  { %2543 = vmatprep.subr.bf16.mxu0 %v2791_v19 }
 0x8c0   :  { %2545 = vmatpush3.bf16.msra.mxu0 %v2544_v27 }
 0x8c1   :  { %2546 = vmatprep.subr.bf16.mxu0 %v2791_v19 }
 0x8c4   :  { %2548 = vmatpush3.bf16.msra.mxu0 %v2547_v31 }
 0x8c5   :  { %2549 = vmatprep.subr.bf16.mxu0 %v2791_v19 }
 0x8c8   :  { %2551 = vmatpush3.bf16.msra.mxu0 %v2550_v36 }
 0x8c9   :  { %2552 = vmatprep.subr.bf16.mxu0 %v2791_v19 }
 0x8cc   :  { %2554 = vmatpush3.bf16.msra.mxu0 %v2553_v38 }
 0x982   :  { %v1710_v43 = vpop.f32.mrb[18].mxu0  ;;  %v1781_v44 = vpop.f32.mrb[18].mxu1 }
 0x983   :  { %v1786_v46 = vadd.f32 %v1710_v43, %v3071_v15  ;;  %v1788_v48 = vadd.f32 %v1781_v44, %v3073_v7  ;;  %v1712_v51 = vpop.f32.mrb[19].mxu0  ;;  %v1783_v52 = vpop.f32.mrb[19].mxu1 }
 0x984   :  { %v1787_v56 = vadd.f32 %v1712_v51, %v3075_v9  ;;  %v1789_v1 = vadd.f32 %v1783_v52, %v3077_v10 }
 0x985   :  { %v1963_v57 = vmul.f32 -1.442695, %v1786_v46  ;;  %v1965_v41 = vmul.f32 -1.442695, %v1788_v48 }
 0x986   :  { %v1964_v37 = vmul.f32 -1.442695, %v1787_v56 }
 0x987   :  { %2719 = vpow2.f32 %v1963_v57 }
 0x988   :  { %2721 = vpow2.f32 %v1964_v37 }
 0x989   :  { %2723 = vtanh.f32 %v1789_v1 }
 0x98a   :  { %2725 = vpow2.f32 %v1965_v41 }
 0x991   :  { %v2720_v45 = vpop.eup %2719 }
 0x992   :  { %v1799_v49 = vadd.f32 1.0, %v2720_v45  ;;  %v2722_v50 = vpop.eup %2721 }
 0x993   :  { %v1800_v15 = vadd.f32 1.0, %v2722_v50  ;;  %v2724_v7 = vpop.eup %2723 }
 0x994   :  { %2727 = vrcp.f32 %v1799_v49  ;;  %v2726_v54 = vpop.eup %2725 }
 0x995   :  { %2729 = vrcp.f32 %v1800_v15  ;;  %v1801_v0 = vadd.f32 1.0, %v2726_v54 }
 0x997   :  { %2731 = vrcp.f32 %v1801_v0 }
 0x99e   :  { %v2728_v59 = vpop.eup %2727 }
 0x99f   :  { %v1810_v63 = vmul.f32 %v2728_v59, %v2724_v7  ;;  %v2730_v9 = vpop.eup %2729 }
 0x9a0   :  { %v1809_v10 = vmul.f32 %v2730_v9, %v3310_v53 }
 0x9a1   :  { %v2732_v8 = vpop.eup %2731 }
 0x9a2   :  { %v1811_v4 = vadd.f32 %v1810_v63, %v1809_v10 }
 0x9a4   :  { %2733 = vtanh.f32 %v1811_v4 }
 0x9ae   :  { %v2734_v12 = vpop.eup %2733 }
 0x9af   :  { %v1813_v13 = vmul.f32 %v2734_v12, %v2732_v8 }
 0x9b1   :  { %2017 = vmatmul.mubr.f32.vlgmr.msra.gmra.mrb[20].mxu0 %v1813_v13 }
 0xa84   :  { %v1903_v21 = vpop.f32.mrb[20].mxu0 }
 0xa85   :  { %v1904_v25 = vadd.f32 %v1966_v17, %v1903_v21  ;;  %v2018_v26 = vpop.f32.mrb[21].mxu0 }
 0xa87   :  { %1907 = vst [vmem:[%s3330_s5] sm:$0xff] %v1904_v25 }
 0xa88   :  { %1912 = vsyncpa [#allocation3], 1 }
 0xa89   :  { %1913 = vsyncpa [#allocation5], 1 }

</bundles_post_ra>
